<compile_context>
chip_gen: v7x
topology: tpu7x:2x2x1
jax: 0.10.0
libtpu: 0.0.40
codegen_flags: <defaults>
</compile_context>

<pallas_src>
import functools

import jax
import jax.numpy as jnp
from jax.experimental import pallas as pl
from jax.experimental.pallas import tpu as pltpu

# ----------------------------- model sizes -----------------------------------
B = 4              # batch
S = 16             # max_src_len
H = 128            # hidden_size = encoder.hidden_size * encoder.num_directions
E = 64             # word_vec_size (embedding_dim)
V = 256            # vocab_size
EXT = 32           # each ext embedding dim (rate / appcate / seqlen / senti)
NUM_LAYERS = 1
WR_IN = H + 4 * EXT                 # 256 : W_r input width (tie_ext_feature=True)
S_PAD = ((S + 127) // 128) * 128    # 128 : lane-dense attention width
MAX_CHUNK = 8                       # decode steps unrolled per grid iteration
VMEM_LIMIT = 32 * 1024 * 1024       # explicit scoped-VMEM limit (safe on v5e/v6e/v7x)


def _pick_chunk(t):
    """Largest legal chunk: whole decode if short, else an 8-aligned divisor."""
    if t <= MAX_CHUNK:
        return t
    for c in range(MAX_CHUNK, 0, -1):
        if t % c == 0 and (c * B) % 8 == 0:
            return c
    return t  # fall back: single grid iteration with the full decode unrolled


# ----------------------------- recurrent kernel -------------------------------
def luong_decoder_chunk_kernel(
    # streamed per chunk of decode steps
    gi_ref,        # (CHUNK*B, 3H) f32   emb @ W_ih + b_ih, per step (hoisted)
    # resident across all grid iterations (constant block index)
    hinit_ref,     # (B, H)        f32   initial decoder hidden (layer 0)
    extc_ref,      # (B, H)        f32   ext_cat @ W_r[ext] + b_r (hoisted)
    encp_ref,      # (B, S_PAD, H) bf16  W_a(encoder_outputs)+b_a, zero-padded
    encv_ref,      # (B, S_PAD, H) bf16  encoder_outputs, zero-padded
    srclen_ref,    # (B, 1)        int32 source lengths
    wrh_ref,       # (H, H)        bf16  hidden half of W_r
    whh_ref, bhh_ref,   # (H, 3H) bf16, (1, 3H) f32   GRU hidden-side weight/bias
    wc_ref, bc_ref,     # (2H, H) bf16, (1, H)  f32   W_c (rows: [ctx ; dec])
    # outputs
    catout_ref,    # (CHUNK*B, H)     f32  streamed: tanh(W_c([ctx; h1]))
    attn_ref,      # (CHUNK*B, S_PAD) f32  streamed: lane-dense attention
    hidden_ref,    # (B, H)           f32  resident: carried GRU hidden state
    *, chunk,
):
    f32, bf16 = jnp.float32, jnp.bfloat16

    # Initialize the carried hidden state from the caller-provided decoder_hidden.
    @pl.when(pl.program_id(0) == 0)
    def _():
        hidden_ref[...] = hinit_ref[...]

    # Step-invariant loads, hoisted out of the unrolled step loop.
    encp = encp_ref[...]                                            # (B, S_PAD, H) bf16
    encv = encv_ref[...]                                            # (B, S_PAD, H) bf16
    extc = extc_ref[...]                                            # (B, H)
    bhh = bhh_ref[...]                                              # (1, 3H)
    bc = bc_ref[...]                                                # (1, H)
    s_idx = jax.lax.broadcasted_iota(jnp.int32, (B, S_PAD), 1)
    valid = s_idx < srclen_ref[...]                                 # (B, S_PAD)

    h = hidden_ref[...]                                             # (B, H) carry
    for i in range(chunk):                                          # static unroll
        # 1) decoder_hidden = tanh(W_r([h ; ext])) — ext half precomputed.
        h0 = jnp.tanh(jnp.dot(h.astype(bf16), wrh_ref[...],
                              preferred_element_type=f32) + extc)   # (B, H)

        # 2) single-step GRU; input-side projection gi is precomputed, so the
        #    only per-step matmul is the hidden-side (B,H)@(H,3H).
        gi = gi_ref[pl.ds(i * B, B), :]                             # (B, 3H) f32
        gh = jnp.dot(h0.astype(bf16), whh_ref[...],
                     preferred_element_type=f32) + bhh              # (B, 3H)
        r = jax.nn.sigmoid(gi[:, 0:H] + gh[:, 0:H])
        z = jax.nn.sigmoid(gi[:, H:2 * H] + gh[:, H:2 * H])
        n = jnp.tanh(gi[:, 2 * H:3 * H] + r * gh[:, 2 * H:3 * H])
        h1 = (1.0 - z) * n + z * h0                                 # (B, H)

        # 3) Luong general attention; W_a(enc)+b_a is precomputed, so this is
        #    pure VPU multiply + XLU reduce (no per-step MXU op).
        scores = jnp.sum(encp * h1[:, None, :], axis=-1)            # (B, S_PAD) f32
        scores = jnp.where(valid, scores, -1e30)                    # finite mask (no NaN)
        m = jnp.max(scores, axis=1, keepdims=True)
        e_s = jnp.exp(scores - m)
        attn = e_s / jnp.sum(e_s, axis=1, keepdims=True)            # (B, S_PAD)
        ctx = jnp.sum(attn[:, :, None] * encv, axis=1)              # (B, H) context

        # 4) concat_output = tanh(W_c([context ; decoder_output]))
        cat = jnp.concatenate([ctx, h1], axis=-1).astype(bf16)      # (B, 2H)
        cat_out = jnp.tanh(jnp.dot(cat, wc_ref[...],
                                   preferred_element_type=f32) + bc)

        catout_ref[pl.ds(i * B, B), :] = cat_out
        attn_ref[pl.ds(i * B, B), :] = attn                         # lane-dense store
        h = h1

    hidden_ref[...] = h


# ----------------------------- vocab head kernel ------------------------------
def vocab_proj_kernel(x_ref, w_ref, b_ref, o_ref):
    # logits tile = cat_out @ W_s[:, tile] + b_s[tile]
    o_ref[...] = jnp.dot(x_ref[...].astype(jnp.bfloat16), w_ref[...],
                         preferred_element_type=jnp.float32) + b_ref[...]


def _vocab_proj(kw, cat_out_flat):
    """(TB, H) @ (H, V) + b, tiled over vocab with a 'parallel' grid axis."""
    tb = cat_out_flat.shape[0]
    tv = 128 if V % 128 == 0 else V
    return pl.pallas_call(
        vocab_proj_kernel,
        out_shape=jax.ShapeDtypeStruct((tb, V), jnp.float32),
        grid_spec=pltpu.PrefetchScalarGridSpec(
            num_scalar_prefetch=0,
            grid=(V // tv,),
            in_specs=[
                pl.BlockSpec((tb, H), lambda j: (0, 0)),
                pl.BlockSpec((H, tv), lambda j: (0, j)),
                pl.BlockSpec((1, tv), lambda j: (0, j)),
            ],
            out_specs=pl.BlockSpec((tb, tv), lambda j: (0, j)),
        ),
        compiler_params=pltpu.CompilerParams(
            dimension_semantics=("parallel",),
            vmem_limit_bytes=VMEM_LIMIT),
    )(cat_out_flat, kw["ws"], kw["bs"])


# ----------------------------- weight preparation ------------------------------
def _prepare_weights(p):
    """Kernel-ready weights. Matmul weights bf16 (intentional); biases f32."""
    bf16 = jnp.bfloat16
    return dict(
        # W_r split: hidden half stays in-kernel, ext half is hoisted.
        wrh=p["WrT"][:H, :].astype(bf16),
        wrx=p["WrT"][H:, :], br=p["br"],
        # GRU: input side hoisted to the wrapper, hidden side in-kernel.
        wih=p["WihT"], bih=p["bih"],
        whh=p["WhhT"].astype(bf16), bhh=p["bhh"],
        # W_a applied to encoder outputs once in the wrapper.
        wa=p["WaT"], ba=p["ba"],
        wc=p["WcT"].astype(bf16), bc=p["bc"],
        ws=p["WsT"].astype(bf16), bs=p["bs"],
    )


def _ext_features(params, rate_sents, cate_sents, srclen_cates, senti_sents):
    # tie_ext_feature=True concat order in forward(): rate, appcate, seqlen, senti.
    return jnp.concatenate(
        [params["ext_rate_embedding"][rate_sents],
         params["ext_appcate_embedding"][cate_sents],
         params["ext_seqlen_embedding"][srclen_cates],
         params["ext_senti_embedding"][senti_sents]], axis=-1)       # (B, 4*EXT)


# ----------------------------- pallas_call driver ------------------------------
def _run_decoder(params, kw, tokens_tb, h_init, ext_cat, enc_b, srclen2d):
    """tokens_tb: (T, B). Returns (cat_out (T*B,H), attn (T*B,S), h_last (B,H))."""
    T = tokens_tb.shape[0]
    chunk = _pick_chunk(T)
    nchunk = T // chunk
    tb = T * B

    # ---- hoisted, step-invariant compute (well-shaped XLA matmuls) ----
    emb = params["embedding"][tokens_tb].reshape(tb, E)              # (T*B, E)
    gi = emb @ kw["wih"] + kw["bih"]                                  # (T*B, 3H)
    extc = ext_cat @ kw["wrx"] + kw["br"]                             # (B, H)
    encp = jnp.einsum("bsh,hk->bsk", enc_b, kw["wa"]) + kw["ba"]      # W_a(enc)+b_a
    encp = jnp.pad(encp, ((0, 0), (0, S_PAD - S), (0, 0))).astype(jnp.bfloat16)
    encv = jnp.pad(enc_b, ((0, 0), (0, S_PAD - S), (0, 0))).astype(jnp.bfloat16)

    def resident(a):
        zeros = (0,) * a.ndim
        return pl.BlockSpec(a.shape, lambda c, z=zeros: z)

    grid_spec = pltpu.PrefetchScalarGridSpec(
        num_scalar_prefetch=0,
        grid=(nchunk,),
        in_specs=[
            pl.BlockSpec((chunk * B, 3 * H), lambda c: (c, 0)),      # streamed gi
            resident(h_init), resident(extc), resident(encp), resident(encv),
            resident(srclen2d),
            resident(kw["wrh"]),
            resident(kw["whh"]), resident(kw["bhh"]),
            resident(kw["wc"]), resident(kw["bc"]),
        ],
        out_specs=(
            pl.BlockSpec((chunk * B, H), lambda c: (c, 0)),          # streamed cat_out
            pl.BlockSpec((chunk * B, S_PAD), lambda c: (c, 0)),      # streamed attention
            pl.BlockSpec((B, H), lambda c: (0, 0)),                  # resident hidden carry
        ),
    )

    cat_out, attn_pad, h_last = pl.pallas_call(
        functools.partial(luong_decoder_chunk_kernel, chunk=chunk),
        out_shape=(
            jax.ShapeDtypeStruct((tb, H), jnp.float32),
            jax.ShapeDtypeStruct((tb, S_PAD), jnp.float32),
            jax.ShapeDtypeStruct((B, H), jnp.float32),
        ),
        grid_spec=grid_spec,
        compiler_params=pltpu.CompilerParams(
            dimension_semantics=("arbitrary",),
            vmem_limit_bytes=VMEM_LIMIT),
    )(gi, h_init, extc, encp, encv, srclen2d,
      kw["wrh"], kw["whh"], kw["bhh"], kw["wc"], kw["bc"])

    return cat_out, attn_pad[:, :S], h_last


# ----------------------------- module-style wrappers ---------------------------
@jax.jit
def luong_attn_decoder_forward(params, input_seq, decoder_hidden, encoder_outputs,
                               src_lens, rate_sents, cate_sents, srclen_cates,
                               senti_sents):
    """Single decode step — exactly LuongAttnDecoderRNN.forward (T = 1).

    Returns (output (B,V), decoder_hidden (num_layers,B,H), attention_weights (B,S)).
    """
    kw = _prepare_weights(params)
    ext_cat = _ext_features(params, rate_sents, cate_sents, srclen_cates, senti_sents)
    enc_b = jnp.transpose(encoder_outputs, (1, 0, 2))                 # (B, S, H)
    srclen2d = src_lens.astype(jnp.int32)[:, None]

    cat_out, attn, h_last = _run_decoder(params, kw, input_seq[None],
                                         decoder_hidden[0], ext_cat, enc_b, srclen2d)
    logits = _vocab_proj(kw, cat_out)                                 # (B, V)
    return logits, h_last[None, :, :], attn


@jax.jit
def luong_attn_decoder_decode_teacher_forced(params, input_tokens, decoder_hidden,
                                             encoder_outputs, src_lens, rate_sents,
                                             cate_sents, srclen_cates, senti_sents):
    """T teacher-forced applications of the module's forward.

    The whole recurrent decode (hidden carried in VMEM, weights resident) runs
    in ceil(T/CHUNK) grid iterations of ONE pallas_call; the vocab projection
    for all T*B rows runs afterwards as a second vocab-tiled pallas_call.
    Returns (logits (T,B,V), hidden (num_layers,B,H), attn (T,B,S)).
    """
    kw = _prepare_weights(params)
    T = input_tokens.shape[0]
    ext_cat = _ext_features(params, rate_sents, cate_sents, srclen_cates, senti_sents)
    enc_b = jnp.transpose(encoder_outputs, (1, 0, 2))
    srclen2d = src_lens.astype(jnp.int32)[:, None]

    cat_out, attn, h_last = _run_decoder(params, kw, input_tokens,
                                         decoder_hidden[0], ext_cat, enc_b, srclen2d)
    logits = _vocab_proj(kw, cat_out).reshape(T, B, V)
    return logits, h_last[None, :, :], attn.reshape(T, B, S)


# ----------------------------- param init -------------------------------------
def init_params(key):
    ks = jax.random.split(key, 20)
    g = lambda k, shape: (0.05 * jax.random.normal(k, shape)).astype(jnp.float32)
    return {
        "embedding": g(ks[0], (V, E)),
        "ext_rate_embedding": g(ks[1], (5, EXT)),
        "ext_appcate_embedding": g(ks[2], (10, EXT)),
        "ext_seqlen_embedding": g(ks[3], (10, EXT)),
        "ext_senti_embedding": g(ks[4], (3, EXT)),
        # W_r : Linear(WR_IN -> H)               (pre-transposed to (in, out))
        "WrT": g(ks[5], (WR_IN, H)), "br": g(ks[6], (1, H)),
        # GRU : input_size=E, hidden=H, 1 layer, gates [r|z|n]
        "WihT": g(ks[7], (E, 3 * H)), "bih": g(ks[8], (1, 3 * H)),
        "WhhT": g(ks[9], (H, 3 * H)), "bhh": g(ks[10], (1, 3 * H)),
        # W_a : Linear(H -> H)
        "WaT": g(ks[11], (H, H)), "ba": g(ks[12], (1, H)),
        # W_c : Linear(2H -> H)   (rows: context first, then decoder output)
        "WcT": g(ks[13], (2 * H, H)), "bc": g(ks[14], (1, H)),
        # W_s : Linear(H -> V)
        "WsT": g(ks[15], (H, V)), "bs": g(ks[16], (1, V)),
    }


# ----------------------------- main --------------------------------------------
if __name__ == "__main__":
    key = jax.random.PRNGKey(0)
    kp, k1, k2, k3, k4, k5, k6, k7, k8 = jax.random.split(key, 9)

    params = init_params(kp)

    T = 8
    input_seq = jax.random.randint(k1, (B,), 0, V)                        # (B,)
    decoder_hidden = jax.random.normal(k2, (NUM_LAYERS, B, H), jnp.float32)
    encoder_outputs = jax.random.normal(k3, (S, B, H), jnp.float32)       # (S, B, H)
    src_lens = jnp.array([16, 9, 12, 5], dtype=jnp.int32)                 # (B,)
    rate_sents = jax.random.randint(k4, (B,), 0, 5)
    cate_sents = jax.random.randint(k5, (B,), 0, 10)
    srclen_cates = jax.random.randint(k6, (B,), 0, 10)
    senti_sents = jax.random.randint(k7, (B,), 0, 3)
    tf_tokens = jax.random.randint(k8, (T, B), 0, V).at[0].set(input_seq)  # (T, B)

    # Single step (module forward semantics, T = 1).
    out, dec_hidden, attn_w = luong_attn_decoder_forward(
        params, input_seq, decoder_hidden, encoder_outputs,
        src_lens, rate_sents, cate_sents, srclen_cates, senti_sents)

    # Multi-step teacher-forced decode: whole recurrent loop inside one kernel.
    out_seq, dec_hidden_T, attn_seq = luong_attn_decoder_decode_teacher_forced(
        params, tf_tokens, decoder_hidden, encoder_outputs,
        src_lens, rate_sents, cate_sents, srclen_cates, senti_sents)

    jax.block_until_ready((out, dec_hidden, attn_w, out_seq, dec_hidden_T, attn_seq))

    assert out.shape == (B, V)
    assert dec_hidden.shape == (NUM_LAYERS, B, H)
    assert attn_w.shape == (B, S)
    assert out_seq.shape == (T, B, V)
    assert dec_hidden_T.shape == (NUM_LAYERS, B, H)
    assert attn_seq.shape == (T, B, S)
    # attention weights over valid positions should sum to 1
    assert bool(jnp.all(jnp.abs(jnp.sum(attn_w, axis=1) - 1.0) < 1e-4))
    assert bool(jnp.all(jnp.abs(jnp.sum(attn_seq, axis=2) - 1.0) < 1e-4))
    # step 0 of the teacher-forced decode must match the single-step forward
    assert bool(jnp.max(jnp.abs(out_seq[0] - out)) < 1e-3)
    assert bool(jnp.max(jnp.abs(attn_seq[0] - attn_w)) < 1e-4)

    print("KERNEL_OK")
</pallas_src>

<mosaic_0001>
module attributes {stable_mosaic.version = 11 : i64} {
  func.func @vocab_proj_kernel(%arg0: i32, %arg1: memref<4x128xf32, #tpu.memory_space<vmem>>, %arg2: memref<128x128xbf16, #tpu.memory_space<vmem>>, %arg3: memref<1x128xf32, #tpu.memory_space<vmem>>, %arg4: memref<4x128xf32, #tpu.memory_space<vmem>>) attributes {dimension_semantics = [#tpu.dimension_semantics<parallel>], iteration_bounds = array<i64: 2>, scalar_prefetch = 0 : i64, scratch_operands = 0 : i64, tpu.core_type = #tpu.core_type<tc>, window_params = [{pipeline_mode = #tpu.pipeline_mode<synchronous>, transform_indices = @transform_0, window_bounds = array<i64: 4, 128>}, {transform_indices = @transform_1, window_bounds = array<i64: 128, 128>}, {transform_indices = @transform_2, window_bounds = array<i64: 1, 128>}, {transform_indices = @transform_3, window_bounds = array<i64: 4, 128>}]} {
    %c0 = arith.constant 0 : index
    %c0_0 = arith.constant 0 : index
    %0 = vector.load %arg1[%c0, %c0_0] : memref<4x128xf32, #tpu.memory_space<vmem>>, vector<4x128xf32>
    %1 = arith.truncf %0 : vector<4x128xf32> to vector<4x128xbf16>
    %c0_1 = arith.constant 0 : index
    %c0_2 = arith.constant 0 : index
    %2 = vector.load %arg2[%c0_1, %c0_2] : memref<128x128xbf16, #tpu.memory_space<vmem>>, vector<128x128xbf16>
    %cst = arith.constant dense<0.000000e+00> : vector<4x128xf32>
    %3 = tpu.matmul %1, %2, %cst {dimension_numbers = #tpu.dot_dimension_numbers<[1], [0], [0], [1], [0, 0, 1, 1], [], []>} : vector<4x128xbf16>, vector<128x128xbf16>, vector<4x128xf32> -> vector<4x128xf32>
    %c0_3 = arith.constant 0 : index
    %c0_4 = arith.constant 0 : index
    %4 = vector.load %arg3[%c0_3, %c0_4] : memref<1x128xf32, #tpu.memory_space<vmem>>, vector<1x128xf32>
    %5 = vector.broadcast %4 : vector<1x128xf32> to vector<4x128xf32>
    %6 = arith.addf %3, %5 : vector<4x128xf32>
    %c0_5 = arith.constant 0 : index
    %c0_6 = arith.constant 0 : index
    %7 = vector.load %arg4[%c0_5, %c0_6] : memref<4x128xf32, #tpu.memory_space<vmem>>, vector<4x128xf32>
    tpu.vector_store %arg4[%c0_5, %c0_6], %6 {strides = array<i32>} : memref<4x128xf32, #tpu.memory_space<vmem>>, vector<4x128xf32>,
    return
  }
  func.func @transform_0(%arg0: i32) -> (i32, i32) {
    %c0_i32 = arith.constant 0 : i32
    %c0_i32_0 = arith.constant 0 : i32
    %c0_i32_1 = arith.constant 0 : i32
    return %c0_i32, %c0_i32_0 : i32, i32
  }
  func.func @transform_1(%arg0: i32) -> (i32, i32) {
    %c0_i32 = arith.constant 0 : i32
    %c0_i32_0 = arith.constant 0 : i32
    return %c0_i32, %arg0 : i32, i32
  }
  func.func @transform_2(%arg0: i32) -> (i32, i32) {
    %c0_i32 = arith.constant 0 : i32
    %c0_i32_0 = arith.constant 0 : i32
    return %c0_i32, %arg0 : i32, i32
  }
  func.func @transform_3(%arg0: i32) -> (i32, i32) {
    %c0_i32 = arith.constant 0 : i32
    %c0_i32_0 = arith.constant 0 : i32
    return %c0_i32, %arg0 : i32, i32
  }
}

module attributes {stable_mosaic.version = 11 : i64} {
  func.func @luong_decoder_chunk_kernel(%arg0: i32, %arg1: memref<4x384xf32, #tpu.memory_space<vmem>>, %arg2: memref<4x128xf32, #tpu.memory_space<vmem>>, %arg3: memref<4x128xf32, #tpu.memory_space<vmem>>, %arg4: memref<4x128x128xbf16, #tpu.memory_space<vmem>>, %arg5: memref<4x128x128xbf16, #tpu.memory_space<vmem>>, %arg6: memref<4x1xi32, #tpu.memory_space<vmem>>, %arg7: memref<128x128xbf16, #tpu.memory_space<vmem>>, %arg8: memref<128x384xbf16, #tpu.memory_space<vmem>>, %arg9: memref<1x384xf32, #tpu.memory_space<vmem>>, %arg10: memref<256x128xbf16, #tpu.memory_space<vmem>>, %arg11: memref<1x128xf32, #tpu.memory_space<vmem>>, %arg12: memref<4x128xf32, #tpu.memory_space<vmem>>, %arg13: memref<4x128xf32, #tpu.memory_space<vmem>>, %arg14: memref<4x128xf32, #tpu.memory_space<vmem>>) attributes {dimension_semantics = [#tpu.dimension_semantics<arbitrary>], iteration_bounds = array<i64: 1>, scalar_prefetch = 0 : i64, scratch_operands = 0 : i64, tpu.core_type = #tpu.core_type<tc>, window_params = [{transform_indices = @transform_0, window_bounds = array<i64: 4, 384>}, {pipeline_mode = #tpu.pipeline_mode<synchronous>, transform_indices = @transform_1, window_bounds = array<i64: 4, 128>}, {pipeline_mode = #tpu.pipeline_mode<synchronous>, transform_indices = @transform_2, window_bounds = array<i64: 4, 128>}, {pipeline_mode = #tpu.pipeline_mode<synchronous>, transform_indices = @transform_3, window_bounds = array<i64: 4, 128, 128>}, {pipeline_mode = #tpu.pipeline_mode<synchronous>, transform_indices = @transform_4, window_bounds = array<i64: 4, 128, 128>}, {pipeline_mode = #tpu.pipeline_mode<synchronous>, transform_indices = @transform_5, window_bounds = array<i64: 4, 1>}, {pipeline_mode = #tpu.pipeline_mode<synchronous>, transform_indices = @transform_6, window_bounds = array<i64: 128, 128>}, {pipeline_mode = #tpu.pipeline_mode<synchronous>, transform_indices = @transform_7, window_bounds = array<i64: 128, 384>}, {pipeline_mode = #tpu.pipeline_mode<synchronous>, transform_indices = @transform_8, window_bounds = array<i64: 1, 384>}, {pipeline_mode = #tpu.pipeline_mode<synchronous>, transform_indices = @transform_9, window_bounds = array<i64: 256, 128>}, {pipeline_mode = #tpu.pipeline_mode<synchronous>, transform_indices = @transform_10, window_bounds = array<i64: 1, 128>}, {transform_indices = @transform_11, window_bounds = array<i64: 4, 128>}, {transform_indices = @transform_12, window_bounds = array<i64: 4, 128>}, {pipeline_mode = #tpu.pipeline_mode<synchronous>, transform_indices = @transform_13, window_bounds = array<i64: 4, 128>}]} {
    %c0_i32 = arith.constant 0 : i32
    %0 = arith.cmpi eq, %arg0, %c0_i32 : i32
    %1 = arith.extui %0 : i1 to i32
    %c0_i32_0 = arith.constant 0 : i32
    %2 = arith.cmpi ne, %1, %c0_i32_0 : i32
    scf.if %2 {
      %c0_40 = arith.constant 0 : index
      %c0_41 = arith.constant 0 : index
      %81 = vector.load %arg2[%c0_40, %c0_41] : memref<4x128xf32, #tpu.memory_space<vmem>>, vector<4x128xf32>
      %c0_42 = arith.constant 0 : index
      %c0_43 = arith.constant 0 : index
      %82 = vector.load %arg14[%c0_42, %c0_43] : memref<4x128xf32, #tpu.memory_space<vmem>>, vector<4x128xf32>
      tpu.vector_store %arg14[%c0_42, %c0_43], %81 {strides = array<i32>} : memref<4x128xf32, #tpu.memory_space<vmem>>, vector<4x128xf32>,
    } else {
    }
    %c0 = arith.constant 0 : index
    %c0_1 = arith.constant 0 : index
    %c0_2 = arith.constant 0 : index
    %3 = vector.load %arg4[%c0, %c0_1, %c0_2] : memref<4x128x128xbf16, #tpu.memory_space<vmem>>, vector<4x128x128xbf16>
    %c0_3 = arith.constant 0 : index
    %c0_4 = arith.constant 0 : index
    %c0_5 = arith.constant 0 : index
    %4 = vector.load %arg5[%c0_3, %c0_4, %c0_5] : memref<4x128x128xbf16, #tpu.memory_space<vmem>>, vector<4x128x128xbf16>
    %c0_6 = arith.constant 0 : index
    %c0_7 = arith.constant 0 : index
    %5 = vector.load %arg3[%c0_6, %c0_7] : memref<4x128xf32, #tpu.memory_space<vmem>>, vector<4x128xf32>
    %c0_8 = arith.constant 0 : index
    %c0_9 = arith.constant 0 : index
    %6 = vector.load %arg9[%c0_8, %c0_9] : memref<1x384xf32, #tpu.memory_space<vmem>>, vector<1x384xf32>
    %c0_10 = arith.constant 0 : index
    %c0_11 = arith.constant 0 : index
    %7 = vector.load %arg11[%c0_10, %c0_11] : memref<1x128xf32, #tpu.memory_space<vmem>>, vector<1x128xf32>
    %8 = tpu.iota {dimensions = array<i32: 1>} : vector<4x128xi32>
    %c0_12 = arith.constant 0 : index
    %c0_13 = arith.constant 0 : index
    %9 = vector.load %arg6[%c0_12, %c0_13] : memref<4x1xi32, #tpu.memory_space<vmem>>, vector<4x1xi32>
    %10 = vector.broadcast %9 : vector<4x1xi32> to vector<4x128xi32>
    %11 = arith.cmpi slt, %8, %10 : vector<4x128xi32>
    %c0_14 = arith.constant 0 : index
    %c0_15 = arith.constant 0 : index
    %12 = vector.load %arg14[%c0_14, %c0_15] : memref<4x128xf32, #tpu.memory_space<vmem>>, vector<4x128xf32>
    %13 = arith.truncf %12 : vector<4x128xf32> to vector<4x128xbf16>
    %c0_16 = arith.constant 0 : index
    %c0_17 = arith.constant 0 : index
    %14 = vector.load %arg7[%c0_16, %c0_17] : memref<128x128xbf16, #tpu.memory_space<vmem>>, vector<128x128xbf16>
    %cst = arith.constant dense<0.000000e+00> : vector<4x128xf32>
    %15 = tpu.matmul %13, %14, %cst {dimension_numbers = #tpu.dot_dimension_numbers<[1], [0], [0], [1], [0, 0, 1, 1], [], []>} : vector<4x128xbf16>, vector<128x128xbf16>, vector<4x128xf32> -> vector<4x128xf32>
    %16 = arith.addf %15, %5 : vector<4x128xf32>
    %17 = math.tanh %16 : vector<4x128xf32>
    %c0_18 = arith.constant 0 : index
    %c0_19 = arith.constant 0 : index
    %18 = vector.load %arg1[%c0_18, %c0_19] : memref<4x384xf32, #tpu.memory_space<vmem>>, vector<4x384xf32>
    %19 = arith.truncf %17 : vector<4x128xf32> to vector<4x128xbf16>
    %c0_20 = arith.constant 0 : index
    %c0_21 = arith.constant 0 : index
    %20 = vector.load %arg8[%c0_20, %c0_21] : memref<128x384xbf16, #tpu.memory_space<vmem>>, vector<128x384xbf16>
    %cst_22 = arith.constant dense<0.000000e+00> : vector<4x384xf32>
    %21 = tpu.matmul %19, %20, %cst_22 {dimension_numbers = #tpu.dot_dimension_numbers<[1], [0], [0], [1], [0, 0, 1, 1], [], []>} : vector<4x128xbf16>, vector<128x384xbf16>, vector<4x384xf32> -> vector<4x384xf32>
    %22 = vector.broadcast %6 : vector<1x384xf32> to vector<4x384xf32>
    %23 = arith.addf %21, %22 : vector<4x384xf32>
    %24 = vector.extract_strided_slice %18 {offsets = [0, 0], sizes = [4, 128], strides = [1, 1]} : vector<4x384xf32> to vector<4x128xf32>
    %25 = vector.extract_strided_slice %23 {offsets = [0, 0], sizes = [4, 128], strides = [1, 1]} : vector<4x384xf32> to vector<4x128xf32>
    %26 = arith.addf %24, %25 : vector<4x128xf32>
    %27 = arith.negf %26 : vector<4x128xf32>
    %28 = math.exp %27 : vector<4x128xf32>
    %cst_23 = arith.constant 1.000000e+00 : f32
    %29 = vector.broadcast %cst_23 : f32 to vector<4x128xf32>
    %30 = arith.addf %29, %28 : vector<4x128xf32>
    %31 = arith.divf %29, %30 : vector<4x128xf32>
    %32 = vector.extract_strided_slice %18 {offsets = [0, 128], sizes = [4, 128], strides = [1, 1]} : vector<4x384xf32> to vector<4x128xf32>
    %33 = vector.extract_strided_slice %23 {offsets = [0, 128], sizes = [4, 128], strides = [1, 1]} : vector<4x384xf32> to vector<4x128xf32>
    %34 = arith.addf %32, %33 : vector<4x128xf32>
    %35 = arith.negf %34 : vector<4x128xf32>
    %36 = math.exp %35 : vector<4x128xf32>
    %cst_24 = arith.constant 1.000000e+00 : f32
    %37 = vector.broadcast %cst_24 : f32 to vector<4x128xf32>
    %38 = arith.addf %37, %36 : vector<4x128xf32>
    %39 = arith.divf %37, %38 : vector<4x128xf32>
    %40 = vector.extract_strided_slice %18 {offsets = [0, 256], sizes = [4, 128], strides = [1, 1]} : vector<4x384xf32> to vector<4x128xf32>
    %41 = vector.extract_strided_slice %23 {offsets = [0, 256], sizes = [4, 128], strides = [1, 1]} : vector<4x384xf32> to vector<4x128xf32>
    %42 = arith.mulf %31, %41 : vector<4x128xf32>
    %43 = arith.addf %40, %42 : vector<4x128xf32>
    %44 = math.tanh %43 : vector<4x128xf32>
    %cst_25 = arith.constant 1.000000e+00 : f32
    %45 = vector.broadcast %cst_25 : f32 to vector<4x128xf32>
    %46 = arith.subf %45, %39 : vector<4x128xf32>
    %47 = arith.mulf %46, %44 : vector<4x128xf32>
    %48 = arith.mulf %39, %17 : vector<4x128xf32>
    %49 = arith.addf %47, %48 : vector<4x128xf32>
    %50 = vector.shape_cast %49 : vector<4x128xf32> to vector<4x1x128xf32>
    %51 = arith.extf %3 : vector<4x128x128xbf16> to vector<4x128x128xf32>
    %52 = vector.broadcast %50 : vector<4x1x128xf32> to vector<4x128x128xf32>
    %53 = arith.mulf %51, %52 : vector<4x128x128xf32>
    %cst_26 = arith.constant dense<0.000000e+00> : vector<4x128xf32>
    %54 = vector.multi_reduction <add>, %53, %cst_26 [2] : vector<4x128x128xf32> to vector<4x128xf32>
    %cst_27 = arith.constant -1.000000e+30 : f32
    %55 = vector.broadcast %cst_27 : f32 to vector<4x128xf32>
    %56 = arith.select %11, %54, %55 : vector<4x128xi1>, vector<4x128xf32>
    %cst_28 = arith.constant dense<0xFF800000> : vector<4xf32>
    %57 = vector.multi_reduction <maximumf>, %56, %cst_28 [1] : vector<4x128xf32> to vector<4xf32>
    %58 = vector.shape_cast %57 : vector<4xf32> to vector<4x1xf32>
    %59 = vector.broadcast %58 : vector<4x1xf32> to vector<4x128xf32>
    %60 = arith.subf %56, %59 : vector<4x128xf32>
    %61 = math.exp %60 : vector<4x128xf32>
    %cst_29 = arith.constant dense<0.000000e+00> : vector<4xf32>
    %62 = vector.multi_reduction <add>, %61, %cst_29 [1] : vector<4x128xf32> to vector<4xf32>
    %63 = vector.shape_cast %62 : vector<4xf32> to vector<4x1xf32>
    %64 = vector.broadcast %63 : vector<4x1xf32> to vector<4x128xf32>
    %65 = arith.divf %61, %64 : vector<4x128xf32>
    %66 = vector.shape_cast %65 : vector<4x128xf32> to vector<4x128x1xf32>
    %67 = arith.extf %4 : vector<4x128x128xbf16> to vector<4x128x128xf32>
    %68 = vector.broadcast %66 : vector<4x128x1xf32> to vector<4x128x128xf32>
    %69 = arith.mulf %68, %67 : vector<4x128x128xf32>
    %cst_30 = arith.constant dense<0.000000e+00> : vector<4x128xf32>
    %70 = vector.multi_reduction <add>, %69, %cst_30 [1] : vector<4x128x128xf32> to vector<4x128xf32>
    %71 = tpu.concatenate %70, %49 in 1 : vector<4x128xf32>, vector<4x128xf32> -> vector<4x256xf32>
    %72 = arith.truncf %71 : vector<4x256xf32> to vector<4x256xbf16>
    %c0_31 = arith.constant 0 : index
    %c0_32 = arith.constant 0 : index
    %73 = vector.load %arg10[%c0_31, %c0_32] : memref<256x128xbf16, #tpu.memory_space<vmem>>, vector<256x128xbf16>
    %cst_33 = arith.constant dense<0.000000e+00> : vector<4x128xf32>
    %74 = tpu.matmul %72, %73, %cst_33 {dimension_numbers = #tpu.dot_dimension_numbers<[1], [0], [0], [1], [0, 0, 1, 1], [], []>} : vector<4x256xbf16>, vector<256x128xbf16>, vector<4x128xf32> -> vector<4x128xf32>
    %75 = vector.broadcast %7 : vector<1x128xf32> to vector<4x128xf32>
    %76 = arith.addf %74, %75 : vector<4x128xf32>
    %77 = math.tanh %76 : vector<4x128xf32>
    %c0_34 = arith.constant 0 : index
    %c0_35 = arith.constant 0 : index
    %78 = vector.load %arg12[%c0_34, %c0_35] : memref<4x128xf32, #tpu.memory_space<vmem>>, vector<4x128xf32>
    tpu.vector_store %arg12[%c0_34, %c0_35], %77 {strides = array<i32>} : memref<4x128xf32, #tpu.memory_space<vmem>>, vector<4x128xf32>,
    %c0_36 = arith.constant 0 : index
    %c0_37 = arith.constant 0 : index
    %79 = vector.load %arg13[%c0_36, %c0_37] : memref<4x128xf32, #tpu.memory_space<vmem>>, vector<4x128xf32>
    tpu.vector_store %arg13[%c0_36, %c0_37], %65 {strides = array<i32>} : memref<4x128xf32, #tpu.memory_space<vmem>>, vector<4x128xf32>,
    %c0_38 = arith.constant 0 : index
    %c0_39 = arith.constant 0 : index
    %80 = vector.load %arg14[%c0_38, %c0_39] : memref<4x128xf32, #tpu.memory_space<vmem>>, vector<4x128xf32>
    tpu.vector_store %arg14[%c0_38, %c0_39], %49 {strides = array<i32>} : memref<4x128xf32, #tpu.memory_space<vmem>>, vector<4x128xf32>,
    return
  }
  func.func @transform_0(%arg0: i32) -> (i32, i32) {
    %c0_i32 = arith.constant 0 : i32
    %c0_i32_0 = arith.constant 0 : i32
    return %arg0, %c0_i32 : i32, i32
  }
  func.func @transform_1(%arg0: i32) -> (i32, i32) {
    %c0_i32 = arith.constant 0 : i32
    %c0_i32_0 = arith.constant 0 : i32
    %c0_i32_1 = arith.constant 0 : i32
    return %c0_i32, %c0_i32_0 : i32, i32
  }
  func.func @transform_2(%arg0: i32) -> (i32, i32) {
    %c0_i32 = arith.constant 0 : i32
    %c0_i32_0 = arith.constant 0 : i32
    %c0_i32_1 = arith.constant 0 : i32
    return %c0_i32, %c0_i32_0 : i32, i32
  }
  func.func @transform_3(%arg0: i32) -> (i32, i32, i32) {
    %c0_i32 = arith.constant 0 : i32
    %c0_i32_0 = arith.constant 0 : i32
    %c0_i32_1 = arith.constant 0 : i32
    %c0_i32_2 = arith.constant 0 : i32
    return %c0_i32, %c0_i32_0, %c0_i32_1 : i32, i32, i32
  }
  func.func @transform_4(%arg0: i32) -> (i32, i32, i32) {
    %c0_i32 = arith.constant 0 : i32
    %c0_i32_0 = arith.constant 0 : i32
    %c0_i32_1 = arith.constant 0 : i32
    %c0_i32_2 = arith.constant 0 : i32
    return %c0_i32, %c0_i32_0, %c0_i32_1 : i32, i32, i32
  }
  func.func @transform_5(%arg0: i32) -> (i32, i32) {
    %c0_i32 = arith.constant 0 : i32
    %c0_i32_0 = arith.constant 0 : i32
    %c0_i32_1 = arith.constant 0 : i32
    return %c0_i32, %c0_i32_0 : i32, i32
  }
  func.func @transform_6(%arg0: i32) -> (i32, i32) {
    %c0_i32 = arith.constant 0 : i32
    %c0_i32_0 = arith.constant 0 : i32
    %c0_i32_1 = arith.constant 0 : i32
    return %c0_i32, %c0_i32_0 : i32, i32
  }
  func.func @transform_7(%arg0: i32) -> (i32, i32) {
    %c0_i32 = arith.constant 0 : i32
    %c0_i32_0 = arith.constant 0 : i32
    %c0_i32_1 = arith.constant 0 : i32
    return %c0_i32, %c0_i32_0 : i32, i32
  }
  func.func @transform_8(%arg0: i32) -> (i32, i32) {
    %c0_i32 = arith.constant 0 : i32
    %c0_i32_0 = arith.constant 0 : i32
    %c0_i32_1 = arith.constant 0 : i32
    return %c0_i32, %c0_i32_0 : i32, i32
  }
  func.func @transform_9(%arg0: i32) -> (i32, i32) {
    %c0_i32 = arith.constant 0 : i32
    %c0_i32_0 = arith.constant 0 : i32
    %c0_i32_1 = arith.constant 0 : i32
    return %c0_i32, %c0_i32_0 : i32, i32
  }
  func.func @transform_10(%arg0: i32) -> (i32, i32) {
    %c0_i32 = arith.constant 0 : i32
    %c0_i32_0 = arith.constant 0 : i32
    %c0_i32_1 = arith.constant 0 : i32
    return %c0_i32, %c0_i32_0 : i32, i32
  }
  func.func @transform_11(%arg0: i32) -> (i32, i32) {
    %c0_i32 = arith.constant 0 : i32
    %c0_i32_0 = arith.constant 0 : i32
    return %arg0, %c0_i32 : i32, i32
  }
  func.func @transform_12(%arg0: i32) -> (i32, i32) {
    %c0_i32 = arith.constant 0 : i32
    %c0_i32_0 = arith.constant 0 : i32
    return %arg0, %c0_i32 : i32, i32
  }
  func.func @transform_13(%arg0: i32) -> (i32, i32) {
    %c0_i32 = arith.constant 0 : i32
    %c0_i32_0 = arith.constant 0 : i32
    %c0_i32_1 = arith.constant 0 : i32
    return %c0_i32, %c0_i32_0 : i32, i32
  }
}

</mosaic_0001>

<bundles_post_ra>
// kernel: luong_attn_decoder_forward.3
= control target key start
LH: loop header
LB: loop body
LE: loop exit
PB: predicated region body
PF: predicated region fallthrough
CT: control target
= control target key end

     0   :  { %8 = vsyncpa [#allocation4], 0  ;;  %s809_s0 = inlined_call_operand.vmem [shape: f32[4,128], index: 0, kind: input, shape index: {}]   ;;  %s810_s1 = inlined_call_operand.vmem [shape: bf16[128,256], index: 1, kind: input, shape index: {}]   ;;  %s811_s2 = inlined_call_operand.vmem [shape: f32[1,256], index: 2, kind: input, shape index: {}]   ;;  %s812_s3 = inlined_call_operand.hbm [shape: f32[4,256], index: 3, kind: output, shape index: {}]  }
   0x1   :  { %10 = vsyncpa [#allocation4 + $0x1], 0  ;;  %s673_s12 = smov 0   ;;  %s675_s13 = smov 0  }
   0x2   :  { %s677_s14 = smov 0   ;;  %s679_s15 = smov 0  }
   0x3 LB: > { %s694_s16 = sadd.s32 4294967295, %s648_s15   ;;  %s487_s17 = sadd.s32 4294967294, %s648_s15   ;;  %s648_s15 = sphi %s679_s15, %s818_s15   ;;  %s644_s14 = sphi %s677_s14, %s817_s14   ;;  %s640_s13 = sphi %s675_s13, %s816_s13   ;;  %s636_s12 = sphi %s673_s12, %s815_s12  }
   0x4   : > { %s698_s18 = sadd.s32 1, %s648_s15   ;;  %s44_s19 = sadd.s32 1, %s644_s14 }
   0x5   : > { %s41_s20 = ssub.s32 %s648_s15, %s698_s18  ;;  %p51_p0 = scmp.ne.s32.totalorder %s644_s14, %s640_s13 }
   0x6   : > { %p42_p1 = scmp.eq.s32.totalorder %s41_s20, 0  ;;  %p52_p2 = scmp.eq.s32.totalorder %s648_s15, 0 }
   0x7   : > { %p107_p3 = scmp.eq.s32.totalorder %s694_s16, 1  ;;  %p112_p4 = scmp.ne.s32.totalorder %s640_s13, %s636_s12 }
   0x8   : > { %s710_s21 = scalar_select %p42_p1, %s644_s14, %s44_s19  }
   0x9   : > { %p53_p5 = por %p52_p2, %p51_p0  ;;  %p712_p6 = por %p107_p3, %p51_p0 }
   0xa   : > { %p113_p7 = scmp.eq.s32.totalorder %s487_s17, 1  ;;  %p489_p9 = scmp.ge.s32.totalorder %s648_s15, 2 }
   0xc   : > { %p716_p8 = por %p113_p7, %p112_p4  ;;  %132 = sbr.rel (%p489_p9) target bundleno = 33 (0x21), region = 20 }
  0x13   : > { %135 = sbr.rel (!%p53_p5) target bundleno = 33 (0x21), region = 24  ;;  %s137_s24 = sand.u32 (%p53_p5), 1, %s644_s14  }
  0x14   : > { %s491_s25 = sshll.u32 (%p53_p5), %s648_s15, 2  ;;  %s490_s26 = sshll.u32 (%p53_p5), %s137_s24, 6 }
  0x15   : > { %s728_s29 = scalar_lea.vmem (%p53_p5), %s810_s1, %s491_s25  ;;  %s139_s30 = scalar_lea.vmem (%p53_p5), [#allocation2], %s490_s26 }
  0x16   : > { %v157_v0 = vld [vmem:[%s728_s29] sm:$0xf] (%p53_p5)  ;;  %v159_v1 = vld [vmem:[%s728_s29 + $0x8] sm:$0xf] (%p53_p5)  ;;  %v161_v2 = vld [vmem:[%s728_s29 + $0x10] sm:$0xf] (%p53_p5) }
  0x17   : > { %158 = vst [vmem:[%s139_s30] sm:$0xf] (%p53_p5), %v157_v0  ;;  %160 = vst [vmem:[%s139_s30 + $0x4] sm:$0xf] (%p53_p5), %v159_v1  ;;  %v163_v3 = vld [vmem:[%s728_s29 + $0x18] sm:$0xf] (%p53_p5) }
  0x18   : > { %v165_v4 = vld [vmem:[%s728_s29 + $0x20] sm:$0xf] (%p53_p5)  ;;  %162 = vst [vmem:[%s139_s30 + $0x8] sm:$0xf] (%p53_p5), %v161_v2  ;;  %164 = vst [vmem:[%s139_s30 + $0xc] sm:$0xf] (%p53_p5), %v163_v3 }
  0x19   : > { %166 = vst [vmem:[%s139_s30 + $0x10] sm:$0xf] (%p53_p5), %v165_v4  ;;  %v167_v5 = vld [vmem:[%s728_s29 + $0x28] sm:$0xf] (%p53_p5)  ;;  %v169_v6 = vld [vmem:[%s728_s29 + $0x30] sm:$0xf] (%p53_p5) }
  0x1a   : > { %v171_v7 = vld [vmem:[%s728_s29 + $0x38] sm:$0xf]  ;;  %168 = vst [vmem:[%s139_s30 + $0x14] sm:$0xf] %v167_v5  ;;  %170 = vst [vmem:[%s139_s30 + $0x18] sm:$0xf] %v169_v6 }
  0x1b   : > { %172 = vst [vmem:[%s139_s30 + $0x1c] sm:$0xf] %v171_v7  ;;  %v173_v8 = vld [vmem:[%s728_s29 + $0x40] sm:$0xf]  ;;  %v175_v9 = vld [vmem:[%s728_s29 + $0x48] sm:$0xf] }
  0x1c   : > { %v177_v10 = vld [vmem:[%s728_s29 + $0x50] sm:$0xf]  ;;  %174 = vst [vmem:[%s139_s30 + $0x20] sm:$0xf] %v173_v8  ;;  %176 = vst [vmem:[%s139_s30 + $0x24] sm:$0xf] %v175_v9 }
  0x1d   : > { %178 = vst [vmem:[%s139_s30 + $0x28] sm:$0xf] %v177_v10  ;;  %v179_v11 = vld [vmem:[%s728_s29 + $0x58] sm:$0xf]  ;;  %v181_v12 = vld [vmem:[%s728_s29 + $0x60] sm:$0xf] }
  0x1e   : > { %v183_v13 = vld [vmem:[%s728_s29 + $0x68] sm:$0xf]  ;;  %180 = vst [vmem:[%s139_s30 + $0x2c] sm:$0xf] %v179_v11  ;;  %182 = vst [vmem:[%s139_s30 + $0x30] sm:$0xf] %v181_v12 }
  0x1f   : > { %184 = vst [vmem:[%s139_s30 + $0x34] sm:$0xf] %v183_v13  ;;  %v185_v14 = vld [vmem:[%s728_s29 + $0x70] sm:$0xf]  ;;  %v187_v15 = vld [vmem:[%s728_s29 + $0x78] sm:$0xf] }
  0x20   : > { %186 = vst [vmem:[%s139_s30 + $0x38] sm:$0xf] %v185_v14  ;;  %188 = vst [vmem:[%s139_s30 + $0x3c] sm:$0xf] %v187_v15 }
  0x21 PF: > { %p492_p10 = scmp.ge.s32.totalorder %s648_s15, 1  ;;  %p248_p11 = scmp.lt.s32.totalorder %s648_s15, 3 }
  0x23   : > { %p249_p12 = pnand %p492_p10, %p248_p11 }
  0x24   : > { %s749_s4 = sand.u32 (!%p249_p12), 1, %s640_s13   ;;  %v650_v16 = vmov (!%p249_p12), 0.0   ;;  %vm651_vm0 = vmmov (!%p249_p12), 0   ;;  %v285_v25 = vld [vmem:[%s809_s0] sm:$0xf] (!%p249_p12)  ;;  %p281_p13 = scmp.lt.s32.totalorder (!%p249_p12), %s694_s16, 1 }
  0x25   : > { %252 = sbr.rel (%p249_p12) target bundleno = 299 (0x12b), region = 69  ;;  %517 = vmatprep.subr.bf16.mxu0 (!%p249_p12), %v650_v16  ;;  %s493_s5 = sshll.u32 (!%p249_p12), %s749_s4, 6  ;;  %533 = vmatprep.mubr.msk.bf16.mxu0 (!%p249_p12), %vm651_vm0, %v650_v16  ;;  %v286_v26 = vpack.c.bf16 (!%p249_p12), %v285_v25, %v285_v25 }
  0x26   : > { %s257_s6 = scalar_lea.vmem (!%p249_p12), [#allocation2], %s493_s5  ;;  %s494_s10 = sshll.u32 (!%p249_p12), %s749_s4, 2 }
  0x27   : > { %v578_v17 = vld [vmem:[%s257_s6] sm:$0xff] (!%p249_p12)   ;;  %v579_v18 = vld [vmem:[%s257_s6 + $0x8] sm:$0xff] (!%p249_p12)   ;;  %v580_v19 = vld [vmem:[%s257_s6 + $0x10] sm:$0xff] (!%p249_p12)   ;;  %s505_s20 = sshll.u32 (!%p249_p12), %s694_s16, 6  ;;  %s280_s24 = scalar_lea.vmem (!%p249_p12), [#allocation3], %s494_s10 }
  0x28   : > { %518 = vmatpush3.bf16.msra.mxu0 (!%p249_p12), %v578_v17  ;;  %v581_v20 = vld [vmem:[%s257_s6 + $0x18] sm:$0xff] (!%p249_p12)   ;;  %v582_v21 = vld [vmem:[%s257_s6 + $0x20] sm:$0xff] (!%p249_p12)   ;;  %v583_v22 = vld [vmem:[%s257_s6 + $0x28] sm:$0xff] (!%p249_p12)   ;;  %s413_s25 = sshll.u32 (!%p249_p12), %s280_s24, 4  ;;  %s765_s28 = scalar_lea.hbm (!%p249_p12), %s812_s3, %s505_s20  ;;  %s767_s25 = int_to_ptr.vmem [resolvable:$true] %s413_s25 }
  0x29   : > { %519 = vmatprep.subr.bf16.mxu0 (!%p249_p12), %v650_v16  ;;  %v584_v23 = vld [vmem:[%s257_s6 + $0x30] sm:$0xff] (!%p249_p12)   ;;  %v585_v24 = vld [vmem:[%s257_s6 + $0x38] sm:$0xff] (!%p249_p12)   ;;  %s400_s29 = scalar_lea.sflag (!%p249_p12), [#allocation4], %s749_s4  ;;  %s652_s30 = smov (!%p249_p12), [#allocation3]  }
  0x2a   : > { %s590_s5 = sshll.u32 (!%p249_p12), %s652_s30, 4  ;;  %s591_s5 = int_to_ptr.vmem [resolvable:$false] %s590_s5 }
  0x2b   : > { %s592_s6 = scalar_lea.vmem (!%p249_p12), %s591_s5, 128  ;;  %p593_p3 = scmp.lt.s32.totalorder (!%p249_p12), %s767_s25, %s591_s5 }
  0x2c   : > { %520 = vmatpush3.bf16.msra.mxu0 %v579_v18  ;;  %s282_s9 = scalar_select %p281_p13, %s694_s16, 1 }
  0x2d   : > { %521 = vmatprep.subr.bf16.mxu0 %v650_v16  ;;  %s586_s16 = scalar_lea.vmem %s767_s25, 64 }
  0x2e   : > { %s283_s19 = scalar_lea.vmem %s811_s2, %s282_s9  ;;  %p587_p0 = scmp.ne.s32.totalorder %s767_s25, %s586_s16 }
  0x2f   : > { %v495_v27 = vld [vmem:[%s283_s19] ss:$0 sm:$0xff]  ;;  %p594_p4 = scmp.lt.s32.totalorder %s592_s6, %s586_s16 }
  0x30   : > { %522 = vmatpush3.bf16.msra.mxu0 %v580_v19  ;;  %p588_p1 = pnand %p587_p0, %p712_p6 }
  0x31   : > { %523 = vmatprep.subr.bf16.mxu0 %v650_v16  ;;  %p595_p5 = por %p594_p4, %p593_p3 }
  0x32   : > { %p589_p2 = pneg %p588_p1 }
  0x34   : > { %524 = vmatpush3.bf16.msra.mxu0 %v581_v20  ;;  %p596_p7 = pnand %p595_p5, %p589_p2 }
  0x35   : > { %525 = vmatprep.subr.bf16.mxu0 %v650_v16 }
  0x38   : > { %526 = vmatpush3.bf16.msra.mxu0 %v582_v21 }
  0x39   : > { %527 = vmatprep.subr.bf16.mxu0 %v650_v16 }
  0x3c   : > { %528 = vmatpush3.bf16.msra.mxu0 %v583_v22 }
  0x3d   : > { %529 = vmatprep.subr.bf16.mxu0 %v650_v16 }
  0x40   : > { %530 = vmatpush3.bf16.msra.mxu0 %v584_v23 }
  0x41   : > { %531 = vmatprep.subr.bf16.mxu0 %v650_v16 }
  0x44   : > { %532 = vmatpush3.bf16.msra.mxu0 %v585_v24 }
  0x47   : > { %534 = vmatmul.mubr.bf16.vlgmr.msra.gmra.mrb[0].mxu0 %v286_v26 }
 0x11a   : > { %v392_v28 = vpop.f32.mrb[0].mxu0 }
 0x11b   : > { %v393_v29 = vadd.f32 %v495_v27, %v392_v28  ;;  %v535_v30 = vpop.f32.mrb[1].mxu0 }
 0x11c   : > { %v395_v31 = vpop.f32.mrb[2].mxu0 }
 0x11d   : > { %398 = vst [vmem:[%s280_s24] sm:$0xf] %v393_v29  ;;  %v536_v32 = vpop.f32.mrb[3].mxu0 }
 0x11e   : > { %599 = shalt.err (!%p596_p7)
}
 0x11f   : > { %s600_s4 = scalar_lea.hbm %s765_s28, 64  ;;  %s604_s9 = scalar_lea.hbm %s812_s3, 128 }
 0x120   : > { %p601_p10 = scmp.ne.s32.totalorder %s765_s28, %s600_s4  ;;  %p605_p13 = scmp.lt.u32.totalorder %s765_s28, %s812_s3 }
 0x121   : > { %p606_p0 = scmp.lt.u32.totalorder %s604_s9, %s600_s4  ;;  %p608_p2 = scmp.lt.u32.totalorder %s600_s4, %s765_s28 }
 0x122   : > { %p602_p11 = pnand %p601_p10, %p712_p6 }
 0x123   : > { %p607_p1 = por %p606_p0, %p605_p13 }
 0x124   : > { %p603_p12 = pneg %p602_p11 }
 0x125   : > { %p609_p3 = por %p608_p2, %p607_p1 }
 0x127   : > { %p610_p4 = pnand %p609_p3, %p603_p12 }
 0x129   : > { %613 = shalt.err (!%p610_p4)
}
 0x12a   : > { %537 = dma.vmem_to_hbm [thread:$0]  (%p712_p6), %s767_s25, 64, %s765_s28, %s400_s29  }
 0x12b PF: > { %s425_s17 = sand.u32 1, %s636_s12   ;;  %p540_p5 = pnand %p489_p9, %p716_p8 }
 0x12c   : > { %s426_s19 = scalar_lea.sflag [#allocation4], %s425_s17 }
 0x12d   : > { %631 = dma.done.wait (!%p540_p5), %s426_s19, 64  }
 0x12e   : > { %633 = vsyncadd (!%p540_p5), %s426_s19, 4294967232  ;;  %p13_p7 = scmp.ge.s32.totalorder %s698_s18, 4   ;;  %s815_s12 = smov %s640_s13 }
 0x12f   : > { %s816_s13 = smov %s644_s14  ;;  %s817_s14 = smov %s710_s21 }
 0x130   : > { %s818_s15 = smov %s698_s18  ;;  %15 = sbr.rel (!%p13_p7) target bundleno = 3 (0x3), region = 116 }
 0x137   :  { %431 = vsyncpa [#allocation4], 1 }
 0x138   :  { %433 = vsyncpa [#allocation4 + $0x1], 1 }

// kernel: luong_attn_decoder_forward.2
= control target key start
LH: loop header
LB: loop body
LE: loop exit
PB: predicated region body
PF: predicated region fallthrough
CT: control target
= control target key end

     0   :  { %19 = vsyncpa [#allocation3], 0  ;;  %v2588_v1 = vmov 0.0   ;;  %vm2589_vm0 = vmmov 0   ;;  %s3670_s0 = inlined_call_operand.vmem [shape: f32[4,384], index: 0, kind: input, shape index: {}]   ;;  %s3671_s1 = inlined_call_operand.vmem [shape: f32[4,128], index: 1, kind: input, shape index: {}]   ;;  %s3672_s2 = inlined_call_operand.vmem [shape: f32[4,128], index: 2, kind: input, shape index: {}]   ;;  %s3673_s3 = inlined_call_operand.vmem [shape: bf16[4,128,128], index: 3, kind: input, shape index: {}]   ;;  %s3674_s4 = inlined_call_operand.vmem [shape: bf16[4,128,128], index: 4, kind: input, shape index: {}]   ;;  %s3675_s5 = inlined_call_operand.vmem [shape: s32[4,1], index: 5, kind: input, shape index: {}]   ;;  %s3676_s6 = inlined_call_operand.vmem [shape: bf16[128,128], index: 6, kind: input, shape index: {}]   ;;  %s3677_s7 = inlined_call_operand.vmem [shape: bf16[128,384], index: 7, kind: input, shape index: {}]   ;;  %s3678_s8 = inlined_call_operand.vmem [shape: f32[1,384], index: 8, kind: input, shape index: {}]   ;;  %s3679_s9 = inlined_call_operand.vmem [shape: bf16[256,128], index: 9, kind: input, shape index: {}]   ;;  %s3680_s10 = inlined_call_operand.vmem [shape: f32[1,128], index: 10, kind: input, shape index: {}]   ;;  %s3681_s11 = inlined_call_operand.vmem [shape: f32[4,128], index: 11, kind: output, shape index: {0}]   ;;  %s3682_s12 = inlined_call_operand.hbm [shape: f32[4,128], index: 12, kind: output, shape index: {1}]   ;;  %s3683_s13 = inlined_call_operand.hbm [shape: f32[4,128], index: 13, kind: output, shape index: {2}]  }
   0x1   :  { %v2466_v0 = vld [vmem:[%s3676_s6] sm:$0xff]   ;;  %2419 = vmatprep.subr.bf16.mxu0 %v2588_v1  ;;  %v2467_v2 = vld [vmem:[%s3676_s6 + $0x8] sm:$0xff]   ;;  %2435 = vmatprep.mubr.msk.bf16.mxu0 %vm2589_vm0, %v2588_v1  ;;  %v2468_v3 = vld [vmem:[%s3676_s6 + $0x10] sm:$0xff]  }
   0x2   :  { %2420 = vmatpush3.bf16.msra.mxu0 %v2466_v0  ;;  %v48_v4 = vld [vmem:[%s3671_s1] sm:$0xf]  ;;  %v2474_v5 = vld [vmem:[%s3677_s7 + $0x4] ss:$12 sps:$4 sm:$0xff]   ;;  %v2469_v7 = vld [vmem:[%s3676_s6 + $0x18] sm:$0xff]  }
   0x3   :  { %2421 = vmatprep.subr.bf16.mxu0 %v2588_v1  ;;  %49 = vst [vmem:[#allocation4] sm:$0xf] %v48_v4  ;;  %v2476_v6 = vld [vmem:[%s3677_s7] ss:$12 sps:$4 sm:$0xff]   ;;  %474 = vmatprep.subr.bf16.mxu1 %v2474_v5  ;;  %v2478_v8 = vld [vmem:[%s3677_s7 + $0x1c] ss:$12 sps:$4 sm:$0xff]  }
   0x4   :  { %475 = vmatpush1.bf16.msra.mxu1 %v2476_v6  ;;  %v2480_v9 = vld [vmem:[%s3677_s7 + $0x18] ss:$12 sps:$4 sm:$0xff]   ;;  %v2482_v10 = vld [vmem:[%s3677_s7 + $0x34] ss:$12 sps:$4 sm:$0xff]   ;;  %v2471_v12 = vld [vmem:[%s3676_s6 + $0x28] sm:$0xff]  }
   0x5   :  { %476 = vmatprep.subr.bf16.mxu1 %v2478_v8  ;;  %v2470_v11 = vld [vmem:[%s3676_s6 + $0x20] sm:$0xff]   ;;  %v2484_v13 = vld [vmem:[%s3677_s7 + $0x30] ss:$12 sps:$4 sm:$0xff]   ;;  %v2486_v14 = vld [vmem:[%s3677_s7 + $0x4c] ss:$12 sps:$4 sm:$0xff]  }
   0x6   :  { %2422 = vmatpush3.bf16.msra.mxu0 %v2467_v2  ;;  %v2488_v15 = vld [vmem:[%s3677_s7 + $0x48] ss:$12 sps:$4 sm:$0xff]   ;;  %v2473_v17 = vld [vmem:[%s3676_s6 + $0x38] sm:$0xff]   ;;  %v2481_v21 = vld [vmem:[%s3677_s7 + $0x20] ss:$12 sps:$4 sm:$0xff]  }
   0x7   :  { %2423 = vmatprep.subr.bf16.mxu0 %v2588_v1  ;;  %v2472_v16 = vld [vmem:[%s3676_s6 + $0x30] sm:$0xff]  }
   0x8   :  { %477 = vmatpush1.bf16.msra.mxu1 %v2480_v9  ;;  %v2477_v19 = vld [vmem:[%s3677_s7 + $0x8] ss:$12 sps:$4 sm:$0xff]  }
   0x9   :  { %478 = vmatprep.subr.bf16.mxu1 %v2482_v10 }
   0xa   :  { %2424 = vmatpush3.bf16.msra.mxu0 %v2468_v3  ;;  %v188_v18 = vld [vmem:[#allocation4] sm:$0xf] }
   0xb   :  { %2425 = vmatprep.subr.bf16.mxu0 %v2588_v1  ;;  %v189_v20 = vpack.c.bf16 %v188_v18, %v188_v18 }
   0xc   :  { %479 = vmatpush1.bf16.msra.mxu1 %v2484_v13 }
   0xd   :  { %480 = vmatprep.subr.bf16.mxu1 %v2486_v14 }
   0xe   :  { %2426 = vmatpush3.bf16.msra.mxu0 %v2469_v7 }
   0xf   :  { %2427 = vmatprep.subr.bf16.mxu0 %v2588_v1 }
  0x10   :  { %481 = vmatpush1.bf16.msra.mxu1 %v2488_v15 }
  0x12   :  { %2428 = vmatpush3.bf16.msra.mxu0 %v2470_v11 }
  0x13   :  { %2429 = vmatprep.subr.bf16.mxu0 %v2588_v1 }
  0x16   :  { %2430 = vmatpush3.bf16.msra.mxu0 %v2471_v12 }
  0x17   :  { %2431 = vmatprep.subr.bf16.mxu0 %v2588_v1 }
  0x1a   :  { %2432 = vmatpush3.bf16.msra.mxu0 %v2472_v16 }
  0x1b   :  { %2433 = vmatprep.subr.bf16.mxu0 %v2588_v1 }
  0x1e   :  { %2434 = vmatpush3.bf16.msra.mxu0 %v2473_v17 }
  0x1f   :  { %2439 = vmatprep.subr.bf16.mxu0 %v2588_v1 }
  0x21   :  { %2436 = vmatmul.mubr.bf16.vlgmr.msra.gmra.mrb[0].mxu0 %v189_v20 }
  0x22   :  { %2440 = vmatpush3.bf16.msra.mxu0 %v2477_v19  ;;  %2455 = vmatprep.mubr.msk.bf16.mxu0 %vm2589_vm0, %v2588_v1 }
  0x23   :  { %20 = vsyncpa [#allocation5], 0  ;;  %2441 = vmatprep.subr.bf16.mxu0 %v2588_v1  ;;  %v2485_v22 = vld [vmem:[%s3677_s7 + $0x38] ss:$12 sps:$4 sm:$0xff]   ;;  %v2489_v23 = vld [vmem:[%s3677_s7 + $0x50] ss:$12 sps:$4 sm:$0xff]   ;;  %v181_v45 = vlaneseq }
  0x24   :  { %v2490_v24 = vld [vmem:[%s3677_s7 + $0x64] ss:$12 sps:$4 sm:$0xff]   ;;  %v2492_v25 = vld [vmem:[%s3677_s7 + $0x60] ss:$12 sps:$4 sm:$0xff]   ;;  %v2493_v26 = vld [vmem:[%s3677_s7 + $0x68] ss:$12 sps:$4 sm:$0xff]  }
  0x25   :  { %482 = vmatprep.subr.bf16.mxu1 %v2490_v24  ;;  %v2494_v27 = vld [vmem:[%s3677_s7 + $0x7c] ss:$12 sps:$4 sm:$0xff]   ;;  %v2496_v28 = vld [vmem:[%s3677_s7 + $0x78] ss:$12 sps:$4 sm:$0xff]   ;;  %v2497_v29 = vld [vmem:[%s3677_s7 + $0x80] ss:$12 sps:$4 sm:$0xff]  }
  0x26   :  { %2442 = vmatpush3.bf16.msra.mxu0 %v2481_v21  ;;  %483 = vmatpush1.bf16.msra.mxu1 %v2492_v25  ;;  %v2498_v30 = vld [vmem:[%s3677_s7 + $0x94] ss:$12 sps:$4 sm:$0xff]   ;;  %v2500_v31 = vld [vmem:[%s3677_s7 + $0x90] ss:$12 sps:$4 sm:$0xff]   ;;  %v2501_v32 = vld [vmem:[%s3677_s7 + $0x98] ss:$12 sps:$4 sm:$0xff]  }
  0x27   :  { %2443 = vmatprep.subr.bf16.mxu0 %v2588_v1  ;;  %484 = vmatprep.subr.bf16.mxu1 %v2494_v27  ;;  %v2502_v33 = vld [vmem:[%s3677_s7 + $0xac] ss:$12 sps:$4 sm:$0xff]   ;;  %v2590_v34 = vmov 0   ;;  %v2504_v35 = vld [vmem:[%s3677_s7 + $0xa8] ss:$12 sps:$4 sm:$0xff]   ;;  %v2787_v46 = vshrl.u32 %v181_v45, 7 }
  0x28   :  { %506 = vmatprep.mubr.bf16.mxu1 %v2590_v34  ;;  %2465 = vset.pattern.permute.xlu0 %v2590_v34  ;;  %v2505_v36 = vld [vmem:[%s3677_s7 + $0xb0] ss:$12 sps:$4 sm:$0xff]   ;;  %v178_v37 = vld [vmem:[%s3672_s2] sm:$0xf]  ;;  %v296_v12 = vld [vmem:[%s3670_s0 + $0x8] sm:$0xf] }
  0x29   :  { %v2790_v47 = vsub.s32 0, %v2787_v46  ;;  %v179_v48 = vld [vmem:[%s3678_s8] sm:$0x7]  ;;  %v3685_v49 = vsub.s32 1, %v2787_v46  ;;  %v3684_v6 = vsub.s32 2, %v2787_v46  ;;  %v2318_v25 = vld [vmem:[%s3673_s3 + $0x10] sm:$0xff]  }
  0x2a   :  { %2444 = vmatpush3.bf16.msra.mxu0 %v2485_v22  ;;  %485 = vmatpush1.bf16.msra.mxu1 %v2496_v28  ;;  %v295_v52 = vld [vmem:[%s3670_s0] sm:$0xff]  ;;  %v2591_v15 = vmov 1966171168   ;;  %v2072_v34 = vunpack.c.h.bf16 %v2318_v25  ;;  %vm953_vm1 = vcmask 130112   ;;  %vm960_vm2 = vcmask 195712   ;;  %s2593_s18 = smov [#allocation4]  }
  0x2b   :  { %2445 = vmatprep.subr.bf16.mxu0 %v2588_v1  ;;  %486 = vmatprep.subr.bf16.mxu1 %v2498_v30  ;;  %3687 = vst [vmem:[#allocation8_spill] sm:$0xff] %v2790_v47  ;;  %v334_v50 = vrot.slane %v179_v48, %v2790_v47  ;;  %v338_v51 = vrot.slane %v179_v48, %v3685_v49  ;;  %v563_v59 = vrot.slane %v295_v52, 4  ;;  %v581_v16 = vunpack.c.l.s4 %v2591_v15  ;;  %v2062_v28 = vld [vmem:[%s3673_s3] sm:$0xff]   ;;  %s1996_s19 = sshll.u32 %s2593_s18, 4  ;;  %s1997_s19 = int_to_ptr.vmem [resolvable:$true] %s1996_s19 }
  0x2c   :  { %v342_v8 = vrot.slane %v179_v48, %v3684_v6  ;;  %v2071_v30 = vunpack.c.l.bf16 %v2318_v25  ;;  %v2832_v48 = vld [vmem:[%s3673_s3 + $0x38] sm:$0xff]   ;;  %vm967_vm3 = vcmask 261312   ;;  %vm974_vm4 = vcmask 326912  }
  0x2d   :  { %v582_v18 = vunpack.c.0.s8 %v581_v16  ;;  %vm981_vm5 = vcmask 392512   ;;  %vm988_vm6 = vcmask 458112   ;;  %vm995_vm7 = vcmask 523712  }
  0x2e   :  { %2446 = vmatpush3.bf16.msra.mxu0 %v2489_v23  ;;  %487 = vmatpush1.bf16.msra.mxu1 %v2500_v31  ;;  %v2063_v31 = vunpack.c.l.bf16 %v2062_v28  ;;  %vm1002_vm8 = vcmask 589312   ;;  %vm1009_vm9 = vcmask 654912   ;;  %vm1016_vm10 = vcmask 720512  }
  0x2f   :  { %2447 = vmatprep.subr.bf16.mxu0 %v2588_v1  ;;  %488 = vmatprep.subr.bf16.mxu1 %v2502_v33  ;;  %v585_v23 = vsub.s32 %v582_v18, %v2787_v46  ;;  %v2327_v18 = vld [vmem:[%s3673_s3 + $0x58] sm:$0xff]   ;;  %vm1023_vm11 = vcmask 786112   ;;  %vm1030_vm12 = vcmask 851712   ;;  %vm1037_vm13 = vcmask 917312  }
  0x30   :  { %vm1044_vm14 = vcmask 982912   ;;  %vm1051_vm15 = vcmask 1048512   ;;  %vm1290_vm0 = vcmask 1041409  }
  0x32   :  { %2448 = vmatpush3.bf16.msra.mxu0 %v2493_v26  ;;  %489 = vmatpush1.bf16.msra.mxu1 %v2504_v35 }
  0x33   :  { %2449 = vmatprep.subr.bf16.mxu0 %v2588_v1 }
  0x36   :  { %2450 = vmatpush3.bf16.msra.mxu0 %v2497_v29 }
  0x37   :  { %2451 = vmatprep.subr.bf16.mxu0 %v2588_v1 }
  0x3a   :  { %2452 = vmatpush3.bf16.msra.mxu0 %v2501_v32 }
  0x3b   :  { %2453 = vmatprep.subr.bf16.mxu0 %v2588_v1 }
  0x3e   :  { %2454 = vmatpush3.bf16.msra.mxu0 %v2505_v36  ;;  %v2064_v36 = vunpack.c.h.bf16 %v2062_v28 }
  0xf4   :  { %v288_v38 = vpop.f32.mrb[0].mxu0 }
  0xf5   :  { %v289_v39 = vadd.f32 %v288_v38, %v178_v37  ;;  %v2437_v40 = vpop.f32.mrb[1].mxu0  ;;  %v2319_v37 = vld [vmem:[%s3673_s3 + $0x18] sm:$0xff]   ;;  %v2317_v38 = vld [vmem:[%s3673_s3 + $0x8] sm:$0xff]  }
  0xf6   :  { %v291_v41 = vpop.f32.mrb[2].mxu0  ;;  %v2075_v40 = vunpack.c.l.bf16 %v2319_v37 }
  0xf7   :  { %2522 = vtanh.f32 %v289_v39  ;;  %v2438_v42 = vpop.f32.mrb[3].mxu0 }
  0xf8   :  { %v2067_v42 = vunpack.c.l.bf16 %v2317_v38 }
 0x101   :  { %v2523_v43 = vpop.eup %2522 }
 0x102   :  { %v297_v44 = vpack.c.bf16 %v2523_v43, %v2523_v43 }
 0x104   :  { %507 = vmatmul.mubr.bf16.vlgmr.msra.gmra.mrb[0].mxu1 %v297_v44  ;;  %2456 = vmatmul.mubr.bf16.vlgmr.msra.gmra.mrb[4].mxu0 %v297_v44  ;;  %v2076_v44 = vunpack.c.h.bf16 %v2319_v37 }
 0x1d7   :  { %v508_v53 = vpop.f32.mrb[0].mxu1  ;;  %v549_v54 = vpop.f32.mrb[4].mxu0 }
 0x1d8   :  { %v509_v55 = vadd.f32 %v508_v53, %v334_v50  ;;  %v510_v56 = vpop.f32.mrb[1].mxu1  ;;  %v2457_v57 = vpop.f32.mrb[5].mxu0  ;;  %v550_v10 = vadd.f32 %v549_v54, %v342_v8  ;;  %v2320_v53 = vld [vmem:[%s3673_s3 + $0x20] sm:$0xff]  }
 0x1d9   :  { %v511_v58 = vadd.f32 %v510_v56, %v338_v51  ;;  %v512_v60 = vpop.f32.mrb[2].mxu1  ;;  %v552_v61 = vpop.f32.mrb[6].mxu0  ;;  %v2841_v54 = vld [vmem:[%s3673_s3 + $0x80] sm:$0xff]   ;;  %v2079_v57 = vunpack.c.l.bf16 %v2320_v53 }
 0x1da   :  { %v555_v62 = vadd.f32 %v509_v55, %v295_v52  ;;  %v513_v63 = vpop.f32.mrb[3].mxu1  ;;  %v2458_v0 = vpop.f32.mrb[7].mxu0  ;;  %v2068_v52 = vunpack.c.h.bf16 %v2317_v38  ;;  %v2092_v55 = vunpack.c.h.bf16 %v2832_v48  ;;  %v2127_v61 = vunpack.c.l.bf16 %v2841_v54  ;;  %v2329_v38 = vld [vmem:[%s3673_s3 + $0x68] sm:$0xff]  }
 0x1db   :  { %v565_v2 = vadd.f32 %v563_v59, %v511_v58 }
 0x1dc   :  { %v2042_v1 = vmul.f32 -1.442695, %v555_v62  ;;  %v2853_v62 = vld [vmem:[%s3673_s3 + $0x88] sm:$0xff]  }
 0x1dd   :  { %v2043_v3 = vmul.f32 -1.442695, %v565_v2 }
 0x1de   :  { %2524 = vpow2.f32 %v2042_v1  ;;  %v2080_v1 = vunpack.c.h.bf16 %v2320_v53  ;;  %v2128_v53 = vunpack.c.h.bf16 %v2841_v54  ;;  %v2132_v54 = vunpack.c.h.bf16 %v2853_v62 }
 0x1df   :  { %2526 = vpow2.f32 %v2043_v3 }
 0x1e8   :  { %v2525_v4 = vpop.eup %2524 }
 0x1e9   :  { %v559_v5 = vadd.f32 1.0, %v2525_v4  ;;  %v2527_v7 = vpop.eup %2526  ;;  %v2131_v4 = vunpack.c.l.bf16 %v2853_v62  ;;  %v2932_v62 = vld [vmem:[%s3673_s3 + $0xc0] sm:$0xff]  }
 0x1ea   :  { %v569_v9 = vadd.f32 1.0, %v2527_v7  ;;  %v2326_v7 = vld [vmem:[%s3673_s3 + $0x50] sm:$0xff]  }
 0x1eb   :  { %2528 = vrcp.f32 %v559_v5  ;;  %v2321_v5 = vld [vmem:[%s3673_s3 + $0x28] sm:$0xff]   ;;  %v2104_v16 = vunpack.c.h.bf16 %v2326_v7 }
 0x1ec   :  { %2530 = vrcp.f32 %v569_v9  ;;  %v2083_v9 = vunpack.c.l.bf16 %v2321_v5 }
 0x1f5   :  { %v2529_v11 = vpop.eup %2528 }
 0x1f6   :  { %v572_v13 = vmul.f32 %v2529_v11, %v550_v10  ;;  %v2531_v17 = vpop.eup %2530 }
 0x1f7   :  { %v575_v19 = vsub.f32 1.0, %v2531_v17  ;;  %v577_v22 = vmul.f32 %v2531_v17, %v2523_v43  ;;  %v2322_v17 = vld [vmem:[%s3673_s3 + $0x30] sm:$0xff]  }
 0x1f8   :  { %v573_v14 = vadd.f32 %v572_v13, %v296_v12  ;;  %v2103_v12 = vunpack.c.l.bf16 %v2326_v7 }
 0x1fa   :  { %2532 = vtanh.f32 %v573_v14  ;;  %v2084_v14 = vunpack.c.h.bf16 %v2321_v5  ;;  %v2334_v5 = vld [vmem:[%s3673_s3 + $0x90] sm:$0xff]  }
 0x204   :  { %v2533_v20 = vpop.eup %2532 }
 0x205   :  { %v576_v21 = vmul.f32 %v2533_v20, %v575_v19  ;;  %v2087_v20 = vunpack.c.l.bf16 %v2322_v17 }
 0x207   :  { %v578_v24 = vadd.f32 %v577_v22, %v576_v21  ;;  %v2107_v22 = vunpack.c.l.bf16 %v2327_v18 }
 0x209   :  { %v586_v26 = vrot.slane %v578_v24, %v585_v23  ;;  %v1799_v27 = vpack.c.bf16 %v578_v24, %v578_v24  ;;  %1977 = vst [vmem:[#allocation4] sm:$0xf] %v578_v24  ;;  %v2088_v24 = vunpack.c.h.bf16 %v2322_v17  ;;  %v2335_v17 = vld [vmem:[%s3673_s3 + $0x98] sm:$0xff]  }
 0x20b   :  { %v594_v29 = vrot.slane %v586_v26, %v585_v23  ;;  %1966 = vmatprep.mubr.bf16.mxu1 %v1799_v27  ;;  %v587_v58 = vcombine.high %v586_v26, %v586_v26  ;;  %v2108_v26 = vunpack.c.h.bf16 %v2327_v18  ;;  %v2328_v27 = vld [vmem:[%s3673_s3 + $0x60] sm:$0xff]   ;;  %v2341_v18 = vld [vmem:[%s3673_s3 + $0xc8] sm:$0xff]  }
 0x20c   :  { %v2112_v37 = vunpack.c.h.bf16 %v2328_v27 }
 0x20d   :  { %v2816_v32 = vrot.slane %v594_v29, %v2790_v47  ;;  %v602_v50 = vcombine.high %v594_v29, %v594_v29  ;;  %v2859_v2 = vrot.slane %v587_v58, %v585_v23  ;;  %v2091_v29 = vunpack.c.l.bf16 %v2832_v48 }
 0x20f   :  { %v692_v33 = vmul.f32 %v2071_v30, %v2816_v32  ;;  %v688_v35 = vmul.f32 %v2063_v31, %v2816_v32  ;;  %v693_v39 = vmul.f32 %v2072_v34, %v2816_v32  ;;  %v689_v41 = vmul.f32 %v2064_v36, %v2816_v32 }
 0x210   :  { %v694_v43 = vmul.f32 %v2075_v40, %v2816_v32  ;;  %v690_v51 = vmul.f32 %v2067_v42, %v2816_v32  ;;  %v695_v56 = vmul.f32 %v2076_v44, %v2816_v32  ;;  %v2846_v59 = vrot.slane %v602_v50, %v2790_v47 }
 0x211   :  { %760 = vadd.xlane.f32.xlu1 %v692_v33  ;;  %752 = vadd.xlane.f32.xlu0 %v688_v35  ;;  %v691_v60 = vmul.f32 %v2068_v52, %v2816_v32  ;;  %v2856_v63 = vmul.f32 %v2092_v55, %v2816_v32  ;;  %v696_v0 = vmul.f32 %v2079_v57, %v2816_v32  ;;  %v2111_v31 = vunpack.c.l.bf16 %v2328_v27  ;;  %v2324_v33 = vld [vmem:[%s3673_s3 + $0x40] sm:$0xff]   ;;  %v2342_v27 = vld [vmem:[%s3673_s3 + $0xd0] sm:$0xff]  }
 0x212   :  { %v720_v3 = vmul.f32 %v2127_v61, %v2846_v59  ;;  %v697_v8 = vmul.f32 %v2080_v1, %v2816_v32  ;;  %v2872_v10 = vrot.slane %v2859_v2, %v2790_v47  ;;  %v722_v11 = vmul.f32 %v2131_v4, %v2846_v59 }
 0x213   :  { %v698_v13 = vmul.f32 %v2083_v9, %v2816_v32  ;;  %v699_v19 = vmul.f32 %v2084_v14, %v2816_v32  ;;  %v700_v23 = vmul.f32 %v2087_v20, %v2816_v32  ;;  %v701_v28 = vmul.f32 %v2088_v24, %v2816_v32 }
 0x214   :  { %v708_v15 = vmul.f32 %v2103_v12, %v2872_v10  ;;  %v709_v21 = vmul.f32 %v2104_v16, %v2872_v10  ;;  %v710_v25 = vmul.f32 %v2107_v22, %v2872_v10  ;;  %v711_v30 = vmul.f32 %v2108_v26, %v2872_v10  ;;  %v2336_v26 = vld [vmem:[%s3673_s3 + $0xa0] sm:$0xff]  }
 0x215   :  { %762 = vadd.xlane.f32.xlu1 %v693_v39  ;;  %754 = vadd.xlane.f32.xlu0 %v689_v41  ;;  %v702_v34 = vmul.f32 %v2091_v29, %v2816_v32  ;;  %v2095_v35 = vunpack.c.l.bf16 %v2324_v33  ;;  %v712_v36 = vmul.f32 %v2111_v31, %v2872_v10  ;;  %v2096_v40 = vunpack.c.h.bf16 %v2324_v33  ;;  %v2325_v32 = vld [vmem:[%s3673_s3 + $0x48] sm:$0xff]  }
 0x216   :  { %v713_v41 = vmul.f32 %v2112_v37, %v2872_v10  ;;  %v2115_v42 = vunpack.c.l.bf16 %v2329_v38  ;;  %v2099_v44 = vunpack.c.l.bf16 %v2325_v32  ;;  %v2116_v50 = vunpack.c.h.bf16 %v2329_v38  ;;  %v2337_v37 = vld [vmem:[%s3673_s3 + $0xa8] sm:$0xff]   ;;  %v2343_v38 = vld [vmem:[%s3673_s3 + $0xd8] sm:$0xff]  }
 0x217   :  { %v704_v39 = vmul.f32 %v2095_v35, %v2872_v10  ;;  %v721_v57 = vmul.f32 %v2128_v53, %v2846_v59  ;;  %v2100_v58 = vunpack.c.h.bf16 %v2325_v32  ;;  %v723_v7 = vmul.f32 %v2132_v54, %v2846_v59 }
 0x218   :  { %v714_v48 = vmul.f32 %v2115_v42, %v2872_v10  ;;  %v706_v52 = vmul.f32 %v2099_v44, %v2872_v10  ;;  %v715_v55 = vmul.f32 %v2116_v50, %v2872_v10  ;;  %v603_v9 = vcombine.high %v2859_v2, %v2859_v2  ;;  %v2338_v50 = vld [vmem:[%s3673_s3 + $0xb0] sm:$0xff]  }
 0x219   :  { %764 = vadd.xlane.f32.xlu1 %v694_v43  ;;  %756 = vadd.xlane.f32.xlu0 %v690_v51  ;;  %v705_v43 = vmul.f32 %v2096_v40, %v2872_v10  ;;  %v2330_v51 = vld [vmem:[%s3673_s3 + $0x70] sm:$0xff]   ;;  %v707_v1 = vmul.f32 %v2100_v58, %v2872_v10  ;;  %v2136_v14 = vunpack.c.h.bf16 %v2334_v5  ;;  %v2160_v2 = vunpack.c.h.bf16 %v2932_v62 }
 0x21a   :  { %v2120_v61 = vunpack.c.h.bf16 %v2330_v51  ;;  %v2139_v20 = vunpack.c.l.bf16 %v2335_v17  ;;  %v2163_v22 = vunpack.c.l.bf16 %v2341_v18  ;;  %v2143_v29 = vunpack.c.l.bf16 %v2336_v26 }
 0x21b   :  { %v2167_v31 = vunpack.c.l.bf16 %v2342_v27  ;;  %v2147_v40 = vunpack.c.l.bf16 %v2337_v37  ;;  %v2171_v42 = vunpack.c.l.bf16 %v2343_v38  ;;  %v2151_v53 = vunpack.c.l.bf16 %v2338_v50 }
 0x21c   :  { %v728_v33 = vmul.f32 %v2143_v29, %v2846_v59  ;;  %v2152_v58 = vunpack.c.h.bf16 %v2338_v50  ;;  %v2159_v54 = vunpack.c.l.bf16 %v2932_v62 }
 0x21d   :  { %766 = vadd.xlane.f32.xlu1 %v695_v56  ;;  %758 = vadd.xlane.f32.xlu0 %v691_v60  ;;  %v2119_v56 = vunpack.c.l.bf16 %v2330_v51  ;;  %v730_v32 = vmul.f32 %v2147_v40, %v2846_v59  ;;  %v2344_v51 = vld [vmem:[%s3673_s3 + $0xe0] sm:$0xff]  }
 0x21f   :  { %v716_v60 = vmul.f32 %v2119_v56, %v2872_v10  ;;  %v2175_v56 = vunpack.c.l.bf16 %v2344_v51 }
 0x221   :  { %768 = vadd.xlane.f32.xlu1 %v696_v0  ;;  %816 = vadd.xlane.f32.xlu0 %v720_v3  ;;  %v2331_v0 = vld [vmem:[%s3673_s3 + $0x78] sm:$0xff]   ;;  %v717_v3 = vmul.f32 %v2120_v61, %v2872_v10  ;;  %v2176_v61 = vunpack.c.h.bf16 %v2344_v51  ;;  %v3051_v51 = vand.u32 127, %v181_v45 }
 0x222   :  { %v2123_v4 = vunpack.c.l.bf16 %v2331_v0  ;;  %v2124_v12 = vunpack.c.h.bf16 %v2331_v0  ;;  %v2345_v0 = vld [vmem:[%s3673_s3 + $0xe8] sm:$0xff]  }
 0x223   :  { %v983_v45 = vadd.s32 4294967248, %v3051_v51 }
 0x224   :  { %v719_v16 = vmul.f32 %v2124_v12, %v2872_v10 }
 0x225   :  { %770 = vadd.xlane.f32.xlu1 %v697_v8  ;;  %820 = vadd.xlane.f32.xlu0 %v722_v11  ;;  %v2135_v8 = vunpack.c.l.bf16 %v2334_v5  ;;  %v718_v11 = vmul.f32 %v2123_v4, %v2872_v10  ;;  %v726_v10 = vmul.f32 %v2139_v20, %v2846_v59  ;;  %v2179_v4 = vunpack.c.l.bf16 %v2345_v0 }
 0x229   :  { %772 = vadd.xlane.f32.xlu1 %v698_v13  ;;  %792 = vadd.xlane.f32.xlu0 %v708_v15  ;;  %v724_v13 = vmul.f32 %v2135_v8, %v2846_v59  ;;  %v2936_v15 = vrot.slane %v603_v9, %v2790_v47  ;;  %v2180_v8 = vunpack.c.h.bf16 %v2345_v0  ;;  %v2339_v9 = vld [vmem:[%s3673_s3 + $0xb8] sm:$0xff]   ;;  %v962_v0 = vadd.s32 4294967272, %v3051_v51 }
 0x22a   :  { %v2155_v12 = vunpack.c.l.bf16 %v2339_v9 }
 0x22b   :  { %v738_v24 = vmul.f32 %v2163_v22, %v2936_v15  ;;  %v740_v35 = vmul.f32 %v2167_v31, %v2936_v15  ;;  %v742_v44 = vmul.f32 %v2171_v42, %v2936_v15  ;;  %v736_v5 = vmul.f32 %v2159_v54, %v2936_v15 }
 0x22c   :  { %v747_v62 = vmul.f32 %v2180_v8, %v2936_v15 }
 0x22d   :  { %774 = vadd.xlane.f32.xlu1 %v699_v19  ;;  %794 = vadd.xlane.f32.xlu0 %v709_v21  ;;  %v725_v19 = vmul.f32 %v2136_v14, %v2846_v59  ;;  %v737_v21 = vmul.f32 %v2160_v2, %v2936_v15  ;;  %v734_v14 = vmul.f32 %v2155_v12, %v2846_v59 }
 0x22e   :  { %v3085_v12 = vsub.s32 %v962_v0, %v2787_v46 }
 0x231   :  { %776 = vadd.xlane.f32.xlu1 %v700_v23  ;;  %796 = vadd.xlane.f32.xlu0 %v710_v25  ;;  %v2140_v23 = vunpack.c.h.bf16 %v2335_v17  ;;  %v2164_v25 = vunpack.c.h.bf16 %v2341_v18  ;;  %v2347_v18 = vld [vmem:[%s3673_s3 + $0xf8] sm:$0xff]  }
 0x232   :  { %v2188_v20 = vunpack.c.h.bf16 %v2347_v18  ;;  %v2187_v22 = vunpack.c.l.bf16 %v2347_v18 }
 0x235   :  { %778 = vadd.xlane.f32.xlu1 %v701_v28  ;;  %798 = vadd.xlane.f32.xlu0 %v711_v30  ;;  %v727_v28 = vmul.f32 %v2140_v23, %v2846_v59  ;;  %v739_v30 = vmul.f32 %v2164_v25, %v2936_v15 }
 0x239   :  { %780 = vadd.xlane.f32.xlu1 %v702_v34  ;;  %800 = vadd.xlane.f32.xlu0 %v712_v36  ;;  %v2144_v34 = vunpack.c.h.bf16 %v2336_v26  ;;  %v2168_v36 = vunpack.c.h.bf16 %v2342_v27 }
 0x23d   :  { %784 = vadd.xlane.f32.xlu1 %v704_v39  ;;  %802 = vadd.xlane.f32.xlu0 %v713_v41  ;;  %v729_v39 = vmul.f32 %v2144_v34, %v2846_v59  ;;  %v741_v41 = vmul.f32 %v2168_v36, %v2936_v15 }
 0x241   :  { %786 = vadd.xlane.f32.xlu1 %v705_v43  ;;  %804 = vadd.xlane.f32.xlu0 %v714_v48  ;;  %v2148_v43 = vunpack.c.h.bf16 %v2337_v37  ;;  %v2172_v48 = vunpack.c.h.bf16 %v2343_v38 }
 0x245   :  { %788 = vadd.xlane.f32.xlu1 %v706_v52  ;;  %806 = vadd.xlane.f32.xlu0 %v715_v55  ;;  %v731_v52 = vmul.f32 %v2148_v43, %v2846_v59  ;;  %v743_v55 = vmul.f32 %v2172_v48, %v2936_v15 }
 0x249   :  { %818 = vadd.xlane.f32.xlu1 %v721_v57  ;;  %808 = vadd.xlane.f32.xlu0 %v716_v60  ;;  %v732_v57 = vmul.f32 %v2151_v53, %v2846_v59  ;;  %v744_v60 = vmul.f32 %v2175_v56, %v2936_v15  ;;  %v948_v53 = vadd.s32 4294967288, %v3051_v51 }
 0x24d   :  { %790 = vadd.xlane.f32.xlu1 %v707_v1  ;;  %810 = vadd.xlane.f32.xlu0 %v717_v3  ;;  %v733_v1 = vmul.f32 %v2152_v58, %v2846_v59  ;;  %v745_v3 = vmul.f32 %v2176_v61, %v2936_v15  ;;  %v969_v58 = vadd.s32 4294967264, %v3051_v51  ;;  %v3062_v61 = vsub.s32 %v948_v53, %v2787_v46 }
 0x24e   :  { %v1025_v53 = vadd.s32 4294967200, %v3051_v51 }
 0x251   :  { %822 = vadd.xlane.f32.xlu1 %v723_v7  ;;  %812 = vadd.xlane.f32.xlu0 %v718_v11  ;;  %v746_v7 = vmul.f32 %v2179_v4, %v2936_v15  ;;  %v2346_v11 = vld [vmem:[%s3673_s3 + $0xf0] sm:$0xff]  }
 0x252   :  { %v2184_v17 = vunpack.c.h.bf16 %v2346_v11 }
 0x255   :  { %824 = vadd.xlane.f32.xlu1 %v724_v13  ;;  %814 = vadd.xlane.f32.xlu0 %v719_v16  ;;  %v2183_v13 = vunpack.c.l.bf16 %v2346_v11  ;;  %v2156_v16 = vunpack.c.h.bf16 %v2339_v9  ;;  %v990_v11 = vadd.s32 4294967240, %v3051_v51 }
 0x257   :  { %v748_v2 = vmul.f32 %v2183_v13, %v2936_v15  ;;  %v3089_v13 = vsub.s32 %v983_v45, %v2787_v46 }
 0x259   :  { %826 = vadd.xlane.f32.xlu1 %v725_v19  ;;  %850 = vadd.xlane.f32.xlu0 %v737_v21  ;;  %v735_v19 = vmul.f32 %v2156_v16, %v2846_v59  ;;  %v749_v21 = vmul.f32 %v2184_v17, %v2936_v15  ;;  %v183_v59 = vld [vmem:[%s3675_s5] sm:$0xf] }
 0x25d   :  { %828 = vadd.xlane.f32.xlu1 %v726_v10  ;;  %852 = vadd.xlane.f32.xlu0 %v738_v24  ;;  %v750_v10 = vmul.f32 %v2187_v22, %v2936_v15 }
 0x261   :  { %830 = vadd.xlane.f32.xlu1 %v727_v28  ;;  %854 = vadd.xlane.f32.xlu0 %v739_v30 }
 0x265   :  { %832 = vadd.xlane.f32.xlu1 %v728_v33  ;;  %856 = vadd.xlane.f32.xlu0 %v740_v35 }
 0x269   :  { %834 = vadd.xlane.f32.xlu1 %v729_v39  ;;  %858 = vadd.xlane.f32.xlu0 %v741_v41 }
 0x26d   :  { %836 = vadd.xlane.f32.xlu1 %v730_v32  ;;  %860 = vadd.xlane.f32.xlu0 %v742_v44 }
 0x271   :  { %838 = vadd.xlane.f32.xlu1 %v731_v52  ;;  %862 = vadd.xlane.f32.xlu0 %v743_v55  ;;  %v955_v55 = vadd.s32 4294967280, %v3051_v51 }
 0x275   :  { %840 = vadd.xlane.f32.xlu1 %v732_v57  ;;  %864 = vadd.xlane.f32.xlu0 %v744_v60  ;;  %v976_v60 = vadd.s32 4294967256, %v3051_v51 }
 0x277   :  { %v3080_v8 = vsub.s32 %v976_v60, %v2787_v46 }
 0x279   :  { %842 = vadd.xlane.f32.xlu1 %v733_v1  ;;  %866 = vadd.xlane.f32.xlu0 %v745_v3  ;;  %v3067_v1 = vsub.s32 %v955_v55, %v2787_v46  ;;  %v3073_v3 = vsub.s32 %v3051_v51, %v2787_v46 }
 0x27d   :  { %848 = vadd.xlane.f32.xlu1 %v736_v5  ;;  %868 = vadd.xlane.f32.xlu0 %v746_v7  ;;  %v3077_v7 = vsub.s32 %v969_v58, %v2787_v46 }
 0x281   :  { %782 = vadd.xlane.f32.xlu1 %v2856_v63  ;;  %870 = vadd.xlane.f32.xlu0 %v747_v62  ;;  %v751_v63 = vmul.f32 %v2188_v20, %v2936_v15  ;;  %v1011_v20 = vadd.s32 4294967216, %v3051_v51 }
 0x283   :  { %v3124_v45 = vsub.s32 %v1011_v20, %v2787_v46 }
 0x285   :  { %844 = vadd.xlane.f32.xlu1 %v734_v14  ;;  %872 = vadd.xlane.f32.xlu0 %v748_v2  ;;  %v997_v14 = vadd.s32 4294967232, %v3051_v51  ;;  %v1004_v2 = vadd.s32 4294967224, %v3051_v51 }
 0x287   :  { %v3116_v58 = vsub.s32 %v1004_v2, %v2787_v46 }
 0x289   :  { %846 = vadd.xlane.f32.xlu1 %v735_v19  ;;  %874 = vadd.xlane.f32.xlu0 %v749_v21 }
 0x28d   :  { %878 = vadd.xlane.f32.xlu1 %v751_v63  ;;  %876 = vadd.xlane.f32.xlu0 %v750_v10  ;;  %v3101_v63 = vsub.s32 %v990_v11, %v2787_v46  ;;  %v1018_v10 = vadd.s32 4294967208, %v3051_v51 }
 0x29e   :  { %v3005_v23 = vpop.xlane.xlu1 %760  ;;  %v3007_v24 = vpop.xlane.xlu0 %752 }
 0x2a2   :  { %v3012_v25 = vpop.xlane.xlu1 %762  ;;  %v3014_v26 = vpop.xlane.xlu0 %754 }
 0x2a3   :  { %185 = vperm.xlu0 %2465, %v183_v59  }
 0x2a6   :  { %v3016_v27 = vpop.xlane.xlu1 %764  ;;  %v3018_v28 = vpop.xlane.xlu0 %756 }
 0x2aa   :  { %v3020_v15 = vpop.xlane.xlu1 %766  ;;  %v3022_v29 = vpop.xlane.xlu0 %758 }
 0x2ae   :  { %v3024_v30 = vpop.xlane.xlu1 %768  ;;  %v3026_v31 = vpop.xlane.xlu0 %816 }
 0x2b2   :  { %v3028_v33 = vpop.xlane.xlu1 %770  ;;  %v3030_v34 = vpop.xlane.xlu0 %820 }
 0x2b6   :  { %v3032_v35 = vpop.xlane.xlu1 %772  ;;  %v793_v36 = vpop.xlane.xlu0 %792 }
 0x2b7   :  { %v1075_v21 = vrot.slane %v793_v36, %v3077_v7 }
 0x2ba   :  { %v3034_v37 = vpop.xlane.xlu1 %774  ;;  %v795_v38 = vpop.xlane.xlu0 %794 }
 0x2bb   :  { %v1080_v59 = vrot.slane %v795_v38, %v3080_v8 }
 0x2be   :  { %v3036_v39 = vpop.xlane.xlu1 %776  ;;  %v3038_v40 = vpop.xlane.xlu0 %796 }
 0x2bf   :  { %v1085_v55 = vrot.slane %v3038_v40, %v3089_v13 }
 0x2c2   :  { %v3040_v41 = vpop.xlane.xlu1 %778  ;;  %v3042_v42 = vpop.xlane.xlu0 %798 }
 0x2c3   :  { %v1090_v38 = vrot.slane %v3042_v42, %v3101_v63 }
 0x2c6   :  { %v3044_v32 = vpop.xlane.xlu1 %780  ;;  %v3046_v43 = vpop.xlane.xlu0 %800 }
 0x2ca   :  { %v785_v44 = vpop.xlane.xlu1 %784  ;;  %v3048_v48 = vpop.xlane.xlu0 %802 }
 0x2cb   :  { %v1056_v62 = vrot.slane %v785_v44, %v3073_v3  ;;  %v1100_v42 = vrot.slane %v3048_v48, %v3116_v58 }
 0x2ce   :  { %v787_v50 = vpop.xlane.xlu1 %786  ;;  %v3053_v52 = vpop.xlane.xlu0 %804 }
 0x2cf   :  { %v1060_v4 = vrot.slane %v787_v50, %v3062_v61  ;;  %v3107_v50 = vsub.s32 %v997_v14, %v2787_v46  ;;  %v1105_v14 = vrot.slane %v3053_v52, %v3124_v45 }
 0x2d1   :  { %v1061_v17 = vsel %vm953_vm1, %v1060_v4, %v1056_v62  ;;  %v1095_v40 = vrot.slane %v3046_v43, %v3107_v50  ;;  %v3136_v62 = vsub.s32 %v1025_v53, %v2787_v46 }
 0x2d2   :  { %v789_v56 = vpop.xlane.xlu1 %788  ;;  %v3057_v57 = vpop.xlane.xlu0 %806 }
 0x2d3   :  { %v1065_v9 = vrot.slane %v789_v56, %v3067_v1 }
 0x2d5   :  { %v1066_v22 = vsel %vm960_vm2, %v1065_v9, %v1061_v17  ;;  %v3130_v9 = vsub.s32 %v1018_v10, %v2787_v46 }
 0x2d6   :  { %v3069_v54 = vpop.xlane.xlu1 %818  ;;  %v809_v5 = vpop.xlane.xlu0 %808 }
 0x2d7   :  { %v1110_v2 = vrot.slane %v3057_v57, %v3130_v9 }
 0x2da   :  { %v791_v16 = vpop.xlane.xlu1 %790  ;;  %v3094_v18 = vpop.xlane.xlu0 %810 }
 0x2db   :  { %v1070_v19 = vrot.slane %v791_v16, %v3085_v12 }
 0x2dd   :  { %v1071_v44 = vsel %vm967_vm3, %v1070_v19, %v1066_v22  ;;  %v1115_v19 = vrot.slane %v809_v5, %v3136_v62 }
 0x2de   :  { %v1076_v36 = vsel %vm974_vm4, %v1075_v21, %v1071_v44  ;;  %v3113_v56 = vpop.xlane.xlu1 %822  ;;  %v3121_v0 = vpop.xlane.xlu0 %812 }
 0x2df   :  { %v1081_v60 = vsel %vm981_vm5, %v1080_v59, %v1076_v36 }
 0x2e0   :  { %v1086_v4 = vsel %vm988_vm6, %v1085_v55, %v1081_v60  ;;  %v952_v60 = vrot.slane %v3014_v26, %v3062_v61  ;;  %v973_v26 = vrot.slane %v3005_v23, %v3077_v7  ;;  %v994_v23 = vrot.slane %v3020_v15, %v3101_v63 }
 0x2e1   :  { %v1091_v11 = vsel %vm995_vm7, %v1090_v38, %v1086_v4  ;;  %v947_v4 = vrot.slane %v3007_v24, %v3073_v3 }
 0x2e2   :  { %v1096_v43 = vsel %vm1002_vm8, %v1095_v40, %v1091_v11  ;;  %v3141_v16 = vpop.xlane.xlu1 %824  ;;  %v3146_v48 = vpop.xlane.xlu0 %814  ;;  %v959_v40 = vrot.slane %v3018_v28, %v3067_v1 }
 0x2e3   :  { %v1101_v17 = vsel %vm1009_vm9, %v1100_v42, %v1096_v43  ;;  %v966_v42 = vrot.slane %v3022_v29, %v3085_v12  ;;  %v954_v43 = vsel %vm953_vm1, %v952_v60, %v947_v4  ;;  %v980_v29 = vrot.slane %v3012_v25, %v3080_v8 }
 0x2e4   :  { %v1106_v20 = vsel %vm1016_vm10, %v1105_v14, %v1101_v17  ;;  %v1039_v25 = vadd.s32 4294967184, %v3051_v51 }
 0x2e5   :  { %v1111_v52 = vsel %vm1023_vm11, %v1110_v2, %v1106_v20  ;;  %v961_v2 = vsel %vm960_vm2, %v959_v40, %v954_v43  ;;  %v987_v40 = vrot.slane %v3016_v27, %v3089_v13  ;;  %v1008_v27 = vrot.slane %v3028_v33, %v3116_v58 }
 0x2e6   :  { %v3152_v21 = vsel %vm1030_vm12, %v1115_v19, %v1111_v52  ;;  %v3154_v22 = vpop.xlane.xlu1 %826  ;;  %v851_v10 = vpop.xlane.xlu0 %850  ;;  %v968_v17 = vsel %vm967_vm3, %v966_v42, %v961_v2  ;;  %v1032_v2 = vadd.s32 4294967192, %v3051_v51 }
 0x2e7   :  { %v975_v24 = vsel %vm974_vm4, %v973_v26, %v968_v17  ;;  %v1001_v17 = vrot.slane %v3024_v30, %v3107_v50  ;;  %v1046_v26 = vadd.s32 4294967176, %v3051_v51  ;;  %v1218_v15 = vrot.slane %v851_v10, %v3062_v61 }
 0x2e8   :  { %v982_v60 = vsel %vm981_vm5, %v980_v29, %v975_v24  ;;  %v3207_v49 = vsub.s32 %v1032_v2, %v2787_v46  ;;  %v3210_v30 = vsub.s32 %v1039_v25, %v2787_v46  ;;  %v1135_v2 = vrot.slane %v3026_v31, %v3073_v3 }
 0x2e9   :  { %v989_v42 = vsel %vm988_vm6, %v987_v40, %v982_v60  ;;  %v1015_v60 = vrot.slane %v3032_v35, %v3124_v45  ;;  %v3217_v35 = vsub.s32 %v1046_v26, %v2787_v46 }
 0x2ea   :  { %v3156_v59 = vpop.xlane.xlu1 %828  ;;  %v853_v57 = vpop.xlane.xlu0 %852  ;;  %v996_v24 = vsel %vm995_vm7, %v994_v23, %v989_v42  ;;  %v1139_v42 = vrot.slane %v3069_v54, %v3062_v61 }
 0x2eb   :  { %v1223_v33 = vrot.slane %v853_v57, %v3067_v1  ;;  %v1003_v23 = vsel %vm1002_vm8, %v1001_v17, %v996_v24  ;;  %v1144_v57 = vrot.slane %v3030_v34, %v3067_v1  ;;  %v1154_v34 = vrot.slane %v3141_v16, %v3077_v7 }
 0x2ec   :  { %v1010_v25 = vsel %vm1009_vm9, %v1008_v27, %v1003_v23  ;;  %v1140_v31 = vsel %vm953_vm1, %v1139_v42, %v1135_v2  ;;  %v1022_v27 = vrot.slane %v3034_v37, %v3130_v9 }
 0x2ed   :  { %v1017_v17 = vsel %vm1016_vm10, %v1015_v60, %v1010_v25  ;;  %v1029_v60 = vrot.slane %v3036_v39, %v3136_v62  ;;  %v1145_v37 = vsel %vm960_vm2, %v1144_v57, %v1140_v31  ;;  %v1036_v25 = vrot.slane %v3040_v41, %v3207_v49 }
 0x2ee   :  { %v3158_v44 = vpop.xlane.xlu1 %830  ;;  %v855_v53 = vpop.xlane.xlu0 %854  ;;  %v1120_v57 = vrot.slane %v3094_v18, %v3207_v49  ;;  %v1043_v41 = vrot.slane %v3044_v32, %v3210_v30  ;;  %v1125_v32 = vrot.slane %v3121_v0, %v3210_v30 }
 0x2ef   :  { %v1228_v10 = vrot.slane %v855_v53, %v3085_v12 }
 0x2f0   :  { %v1121_v18 = vsel %vm1037_vm13, %v1120_v57, %v3152_v21 }
 0x2f2   :  { %v3160_v55 = vpop.xlane.xlu1 %832  ;;  %v857_v5 = vpop.xlane.xlu0 %856 }
 0x2f3   :  { %v1233_v47 = vrot.slane %v857_v5, %v3077_v7  ;;  %v1164_v7 = vrot.slane %v3156_v59, %v3089_v13 }
 0x2f6   :  { %v3162_v36 = vpop.xlane.xlu1 %834  ;;  %v859_v38 = vpop.xlane.xlu0 %858 }
 0x2f7   :  { %v1238_v53 = vrot.slane %v859_v38, %v3080_v8 }
 0x2fa   :  { %v3172_v11 = vpop.xlane.xlu1 %836  ;;  %v861_v14 = vpop.xlane.xlu0 %860 }
 0x2fb   :  { %v1243_v5 = vrot.slane %v861_v14, %v3089_v13 }
 0x2fe   :  { %v3177_v19 = vpop.xlane.xlu1 %838  ;;  %v863_v28 = vpop.xlane.xlu0 %862 }
 0x2ff   :  { %v1248_v1 = vrot.slane %v863_v28, %v3101_v63 }
 0x302   :  { %v3184_v20 = vpop.xlane.xlu1 %840  ;;  %v865_v52 = vpop.xlane.xlu0 %864 }
 0x306   :  { %v3189_v4 = vpop.xlane.xlu1 %842  ;;  %v867_v43 = vpop.xlane.xlu0 %866 }
 0x307   :  { %v1258_v16 = vrot.slane %v867_v43, %v3116_v58  ;;  %v1024_v43 = vsel %vm1023_vm11, %v1022_v27, %v1017_v17 }
 0x30a   :  { %v849_v29 = vpop.xlane.xlu1 %848  ;;  %v869_v40 = vpop.xlane.xlu0 %868 }
 0x30b   :  { %v1214_v6 = vrot.slane %v849_v29, %v3073_v3  ;;  %v1149_v3 = vrot.slane %v3113_v56, %v3085_v12  ;;  %v1159_v12 = vrot.slane %v3154_v22, %v3080_v8  ;;  %v1253_v56 = vrot.slane %v865_v52, %v3107_v50 }
 0x30c   :  { %v1169_v8 = vrot.slane %v3158_v44, %v3101_v63  ;;  %v1263_v22 = vrot.slane %v869_v40, %v3124_v45  ;;  %v1179_v63 = vrot.slane %v3162_v36, %v3116_v58  ;;  %v1189_v58 = vrot.slane %v3177_v19, %v3130_v9 }
 0x30d   :  { %v1219_v29 = vsel %vm953_vm1, %v1218_v15, %v1214_v6  ;;  %v1150_v15 = vsel %vm967_vm3, %v1149_v3, %v1145_v37  ;;  %vm1292_vm1 = vcmask 1042434  }
 0x30e   :  { %v1224_v61 = vsel %vm960_vm2, %v1223_v33, %v1219_v29  ;;  %v3226_v54 = vpop.xlane.xlu1 %782  ;;  %v871_v26 = vpop.xlane.xlu0 %870  ;;  %v1155_v42 = vsel %vm974_vm4, %v1154_v34, %v1150_v15  ;;  %v1174_v33 = vrot.slane %v3160_v55, %v3107_v50  ;;  %v1184_v50 = vrot.slane %v3172_v11, %v3124_v45 }
 0x30f   :  { %v1229_v6 = vsel %vm967_vm3, %v1228_v10, %v1224_v61  ;;  %v1268_v59 = vrot.slane %v871_v26, %v3130_v9  ;;  %v1160_v23 = vsel %vm981_vm5, %v1159_v12, %v1155_v42  ;;  %v1031_v10 = vsel %vm1030_vm12, %v1029_v60, %v1024_v43 }
 0x310   :  { %v1234_v24 = vsel %vm974_vm4, %v1233_v47, %v1229_v6  ;;  %v1165_v29 = vsel %vm988_vm6, %v1164_v7, %v1160_v23  ;;  %v1194_v45 = vrot.slane %v3184_v20, %v3136_v62  ;;  %v1199_v9 = vrot.slane %v3189_v4, %v3207_v49 }
 0x311   :  { %v1239_v38 = vsel %vm981_vm5, %v1238_v53, %v1234_v24  ;;  %v1170_v61 = vsel %vm995_vm7, %v1169_v8, %v1165_v29  ;;  %v1126_v34 = vsel %vm1044_vm14, %v1125_v32, %v1121_v18  ;;  %vm1294_vm2 = vcmask 1043459   ;;  %v3368_v29 = vld [vmem:[%s3674_s4 + $0x8] sm:$0xff]  }
 0x312   :  { %v1244_v47 = vsel %vm988_vm6, %v1243_v5, %v1239_v38  ;;  %v845_v14 = vpop.xlane.xlu1 %844  ;;  %v873_v39 = vpop.xlane.xlu0 %872  ;;  %v1175_v17 = vsel %vm1002_vm8, %v1174_v33, %v1170_v61  ;;  %v1038_v5 = vsel %vm1037_vm13, %v1036_v25, %v1031_v10  ;;  %v1130_v38 = vrot.slane %v3146_v48, %v3217_v35  ;;  %v2506_v10 = vld [vmem:[%s3679_s9 + $0x40] sm:$0xff]   ;;  %v2508_v25 = vld [vmem:[%s3679_s9 + $0x48] sm:$0xff]  }
 0x313   :  { %v1249_v28 = vsel %vm995_vm7, %v1248_v1, %v1244_v47  ;;  %v1273_v36 = vrot.slane %v873_v39, %v3136_v62  ;;  %v1180_v53 = vsel %vm1009_vm9, %v1179_v63, %v1175_v17  ;;  %v1050_v62 = vrot.slane %v3226_v54, %v3217_v35  ;;  %2397 = vmatprep.subr.bf16.mxu1 %v2506_v10 }
 0x314   :  { %v1254_v52 = vsel %vm1002_vm8, %v1253_v56, %v1249_v28  ;;  %v1185_v26 = vsel %vm1016_vm10, %v1184_v50, %v1180_v53  ;;  %v1204_v20 = vrot.slane %v845_v14, %v3210_v30  ;;  %v1045_v27 = vsel %vm1044_vm14, %v1043_v41, %v1038_v5  ;;  %v2355_v41 = vld [vmem:[%s3674_s4 + $0x40] sm:$0xff]  }
 0x315   :  { %v1259_v13 = vsel %vm1009_vm9, %v1258_v16, %v1254_v52  ;;  %v1190_v3 = vsel %vm1023_vm11, %v1189_v58, %v1185_v26  ;;  %v1131_v56 = vsel %vm1051_vm15, %v1130_v38, %v1126_v34  ;;  %vm1298_vm3 = vcmask 1043456  }
 0x316   :  { %v1264_v44 = vsel %vm1016_vm10, %v1263_v22, %v1259_v13  ;;  %v847_v40 = vpop.xlane.xlu1 %846  ;;  %v875_v2 = vpop.xlane.xlu0 %874  ;;  %v1195_v21 = vsel %vm1030_vm12, %v1194_v45, %v1190_v3  ;;  %v1513_v13 = vsub.s32 3, %v2787_v46  ;;  %v3689_v23 = vsub.s32 1, %v2787_v46 }
 0x317   :  { %v1269_v55 = vsel %vm1023_vm11, %v1268_v59, %v1264_v44  ;;  %v1278_v11 = vrot.slane %v875_v2, %v3207_v49  ;;  %v1209_v49 = vrot.slane %v847_v40, %v3217_v35  ;;  %v1200_v0 = vsel %vm1037_vm13, %v1199_v9, %v1195_v21  ;;  %v3688_v59 = vld [vmem:[#allocation8_spill] sm:$0xff]  ;;  %v2507_v2 = vld [vmem:[%s3679_s9] sm:$0xff]   ;;  %v2510_v21 = vld [vmem:[%s3679_s9 + $0x50] sm:$0xff]  }
 0x318   :  { %v1274_v19 = vsel %vm1030_vm12, %v1273_v36, %v1269_v55  ;;  %v1205_v60 = vsel %vm1044_vm14, %v1204_v20, %v1200_v0  ;;  %v3690_v44 = vsub.s32 2, %v2787_v46  ;;  %v2190_v46 = vld [vmem:[%s3674_s4] sm:$0xff]   ;;  %2398 = vmatpush3.bf16.msra.mxu1 %v2507_v2  ;;  %v2195_v36 = vunpack.c.l.bf16 %v3368_v29  ;;  %v2512_v0 = vld [vmem:[%s3679_s9 + $0x58] sm:$0xff]   ;;  %v2517_v2 = vld [vmem:[%s3679_s9 + $0x28] sm:$0xff]  }
 0x319   :  { %v1279_v24 = vsel %vm1037_vm13, %v1278_v11, %v1274_v19  ;;  %v1210_v12 = vsel %vm1051_vm15, %v1209_v49, %v1205_v60  ;;  %v2191_v61 = vunpack.c.l.bf16 %v2190_v46  ;;  %v2192_v58 = vunpack.c.h.bf16 %v2190_v46  ;;  %2399 = vmatprep.subr.bf16.mxu1 %v2508_v25  ;;  %v2509_v49 = vld [vmem:[%s3679_s9 + $0x8] sm:$0xff]  }
 0x31a   :  { %v879_v6 = vpop.xlane.xlu1 %878  ;;  %v877_v31 = vpop.xlane.xlu0 %876  ;;  %v2223_v18 = vunpack.c.l.bf16 %v2355_v41  ;;  %v2224_v26 = vunpack.c.h.bf16 %v2355_v41  ;;  %v2356_v60 = vld [vmem:[%s3674_s4 + $0x48] sm:$0xff]  }
 0x31b   :  { %v1283_v4 = vrot.slane %v877_v31, %v3210_v30  ;;  %v1288_v54 = vrot.slane %v879_v6, %v3217_v35  ;;  %v1052_v30 = vsel %vm1051_vm15, %v1050_v62, %v1045_v27 }
 0x31c   :  { %v1291_v14 = vsel %vm1290_vm0, %v1131_v56, %v1052_v30  ;;  %2400 = vmatpush3.bf16.msra.mxu1 %v2509_v49  ;;  %v2521_v49 = vld [vmem:[%s3679_s9 + $0x38] sm:$0xff]  }
 0x31d   :  { %v1284_v1 = vsel %vm1044_vm14, %v1283_v4, %v1279_v24  ;;  %v1293_v7 = vsel %vm1292_vm1, %v1210_v12, %v1291_v14  ;;  %v2363_v4 = vld [vmem:[%s3674_s4 + $0x80] sm:$0xff]   ;;  %v2511_v24 = vld [vmem:[%s3679_s9 + $0x10] sm:$0xff]   ;;  %2401 = vmatprep.subr.bf16.mxu1 %v2510_v21 }
 0x31e   :  { %v1289_v47 = vsel %vm1051_vm15, %v1288_v54, %v1284_v1  ;;  %v2364_v54 = vld [vmem:[%s3674_s4 + $0x88] sm:$0xff]   ;;  %v2255_v1 = vunpack.c.l.bf16 %v2363_v4  ;;  %v2256_v38 = vunpack.c.h.bf16 %v2363_v4  ;;  %v2371_v14 = vld [vmem:[%s3674_s4 + $0xc0] sm:$0xff]  }
 0x31f   :  { %v1295_v48 = vsel %vm1294_vm2, %v1289_v47, %v1293_v7  ;;  %v2259_v30 = vunpack.c.l.bf16 %v2364_v54  ;;  %v3413_v47 = vld [vmem:[%s3674_s4 + $0x90] sm:$0xff]  }
 0x320   :  { %2402 = vmatpush3.bf16.msra.mxu1 %v2511_v24 }
 0x321   :  { %2403 = vmatprep.subr.bf16.mxu1 %v2512_v0 }
 0x322   :  { %v186_v37 = vpop.permute.xlu0 %185 }
 0x323   :  { %vm187_vm4 = vcmp.lt.s32.totalorder %v3051_v51, %v186_v37  ;;  %v2260_v37 = vunpack.c.h.bf16 %v2364_v54 }
 0x324   :  { %v1297_v35 = vsel %vm187_vm4, %v1295_v48, -1e+30  ;;  %v3421_v48 = vld [vmem:[%s3674_s4 + $0x50] sm:$0xff]  }
 0x325   :  { %v1299_v16 = vsel %vm1298_vm3, %v1297_v35, -inf }
 0x326   :  { %1300 = vmax.xlane.f32.xlu1 %v1299_v16  ;;  %v2227_v16 = vunpack.c.l.bf16 %v2356_v60 }
 0x3b3   :  { %v1301_v28 = vpop.xlane.xlu1 %1300 }
 0x3b4   :  { %v1302_v39 = vsub.f32 %v1297_v35, %v1301_v28  ;;  %v2513_v28 = vld [vmem:[%s3679_s9 + $0x18] sm:$0xff]  }
 0x3b5   :  { %2404 = vmatpush3.bf16.msra.mxu1 %v2513_v28 }
 0x3b6   :  { %v1303_v15 = vmul.f32 1.442695, %v1302_v39 }
 0x3b8   :  { %2534 = vpow2.f32 %v1303_v15  ;;  %v2228_v15 = vunpack.c.h.bf16 %v2356_v60 }
 0x3c2   :  { %v2535_v8 = vpop.eup %2534 }
 0x3c3   :  { %v1305_v22 = vsel %vm1298_vm3, %v2535_v8, 0.0 }
 0x3c4   :  { %1306 = vadd.xlane.f32.xlu1 %v1305_v22  ;;  %v2263_v22 = vunpack.c.l.bf16 %v3413_v47 }
 0x451   :  { %v1307_v52 = vpop.xlane.xlu1 %1306 }
 0x452   :  { %2536 = vrcp.f32 %v1307_v52  ;;  %v2514_v52 = vld [vmem:[%s3679_s9 + $0x60] sm:$0xff]  }
 0x453   :  { %2405 = vmatprep.subr.bf16.mxu1 %v2514_v52 }
 0x45c   :  { %v2537_v42 = vpop.eup %2536 }
 0x45d   :  { %v1309_v33 = vmul.f32 %v2537_v42, %v2535_v8  ;;  %v2515_v42 = vld [vmem:[%s3679_s9 + $0x20] sm:$0xff]  }
 0x45e   :  { %2406 = vmatpush3.bf16.msra.mxu1 %v2515_v42 }
 0x45f   :  { %v3325_v51 = vrot.slane %v1309_v33, %v3688_v59  ;;  %1976 = vst [vmem:[#allocation2] sm:$0xf] %v1309_v33  ;;  %v3329_v43 = vrot.slane %v1309_v33, %v1513_v13  ;;  %v1380_v63 = vrot.slane %v1309_v33, %v3689_v23  ;;  %v1447_v40 = vrot.slane %v1309_v33, %v3690_v44 }
 0x460   :  { %v2287_v33 = vunpack.c.l.bf16 %v2371_v14  ;;  %v2231_v13 = vunpack.c.l.bf16 %v3421_v48 }
 0x461   :  { %1323 = vbcast.lane.b32.xlu0 %v3325_v51, 272  ;;  %1315 = vbcast.lane.b32.xlu1 %v3325_v51, 256 }
 0x465   :  { %1516 = vbcast.lane.b32.xlu0 %v3329_v43, 256  ;;  %1319 = vbcast.lane.b32.xlu1 %v3325_v51, 264 }
 0x469   :  { %1457 = vbcast.lane.b32.xlu0 %v1447_v40, 272  ;;  %1382 = vbcast.lane.b32.xlu1 %v1380_v63, 256 }
 0x46d   :  { %1394 = vbcast.lane.b32.xlu0 %v1380_v63, 280  ;;  %1386 = vbcast.lane.b32.xlu1 %v1380_v63, 264 }
 0x471   :  { %1461 = vbcast.lane.b32.xlu0 %v1447_v40, 280  ;;  %1449 = vbcast.lane.b32.xlu1 %v1447_v40, 256 }
 0x475   :  { %1398 = vbcast.lane.b32.xlu0 %v1380_v63, 288  ;;  %1453 = vbcast.lane.b32.xlu1 %v1447_v40, 264 }
 0x479   :  { %1465 = vbcast.lane.b32.xlu0 %v1447_v40, 288  ;;  %1390 = vbcast.lane.b32.xlu1 %v1380_v63, 272 }
 0x47d   :  { %1402 = vbcast.lane.b32.xlu0 %v1380_v63, 296  ;;  %1520 = vbcast.lane.b32.xlu1 %v3329_v43, 264 }
 0x481   :  { %1469 = vbcast.lane.b32.xlu0 %v1447_v40, 296  ;;  %1327 = vbcast.lane.b32.xlu1 %v3325_v51, 280 }
 0x485   :  { %1406 = vbcast.lane.b32.xlu0 %v1380_v63, 304  ;;  %1524 = vbcast.lane.b32.xlu1 %v3329_v43, 272 }
 0x489   :  { %1473 = vbcast.lane.b32.xlu0 %v1447_v40, 304  ;;  %1331 = vbcast.lane.b32.xlu1 %v3325_v51, 288 }
 0x48d   :  { %1410 = vbcast.lane.b32.xlu0 %v1380_v63, 312  ;;  %1528 = vbcast.lane.b32.xlu1 %v3329_v43, 280 }
 0x491   :  { %1477 = vbcast.lane.b32.xlu0 %v1447_v40, 312  ;;  %1335 = vbcast.lane.b32.xlu1 %v3325_v51, 296 }
 0x495   :  { %1414 = vbcast.lane.b32.xlu0 %v1380_v63, 320  ;;  %1532 = vbcast.lane.b32.xlu1 %v3329_v43, 288 }
 0x499   :  { %1481 = vbcast.lane.b32.xlu0 %v1447_v40, 320  ;;  %1339 = vbcast.lane.b32.xlu1 %v3325_v51, 304 }
 0x49d   :  { %1418 = vbcast.lane.b32.xlu0 %v1380_v63, 328  ;;  %1536 = vbcast.lane.b32.xlu1 %v3329_v43, 296 }
 0x4a1   :  { %1485 = vbcast.lane.b32.xlu0 %v1447_v40, 328  ;;  %1343 = vbcast.lane.b32.xlu1 %v3325_v51, 312 }
 0x4a5   :  { %1422 = vbcast.lane.b32.xlu0 %v1380_v63, 336  ;;  %1540 = vbcast.lane.b32.xlu1 %v3329_v43, 304 }
 0x4a9   :  { %1489 = vbcast.lane.b32.xlu0 %v1447_v40, 336  ;;  %1347 = vbcast.lane.b32.xlu1 %v3325_v51, 320 }
 0x4ad   :  { %1426 = vbcast.lane.b32.xlu0 %v1380_v63, 344  ;;  %1544 = vbcast.lane.b32.xlu1 %v3329_v43, 312 }
 0x4b1   :  { %1493 = vbcast.lane.b32.xlu0 %v1447_v40, 344  ;;  %1351 = vbcast.lane.b32.xlu1 %v3325_v51, 328 }
 0x4b5   :  { %1430 = vbcast.lane.b32.xlu0 %v1380_v63, 352  ;;  %1548 = vbcast.lane.b32.xlu1 %v3329_v43, 320 }
 0x4b9   :  { %1497 = vbcast.lane.b32.xlu0 %v1447_v40, 352  ;;  %1355 = vbcast.lane.b32.xlu1 %v3325_v51, 336 }
 0x4bd   :  { %1434 = vbcast.lane.b32.xlu0 %v1380_v63, 360  ;;  %1552 = vbcast.lane.b32.xlu1 %v3329_v43, 328 }
 0x4c1   :  { %1501 = vbcast.lane.b32.xlu0 %v1447_v40, 360  ;;  %1359 = vbcast.lane.b32.xlu1 %v3325_v51, 344 }
 0x4c5   :  { %1438 = vbcast.lane.b32.xlu0 %v1380_v63, 368  ;;  %1556 = vbcast.lane.b32.xlu1 %v3329_v43, 336 }
 0x4c9   :  { %1505 = vbcast.lane.b32.xlu0 %v1447_v40, 368  ;;  %1363 = vbcast.lane.b32.xlu1 %v3325_v51, 352 }
 0x4cd   :  { %1442 = vbcast.lane.b32.xlu0 %v1380_v63, 376  ;;  %1560 = vbcast.lane.b32.xlu1 %v3329_v43, 344 }
 0x4d1   :  { %1509 = vbcast.lane.b32.xlu0 %v1447_v40, 376  ;;  %1367 = vbcast.lane.b32.xlu1 %v3325_v51, 360  ;;  %v2288_v40 = vunpack.c.h.bf16 %v2371_v14 }
 0x4d3   :  { %v1324_v50 = vpop.permute.xlu0 %1323  ;;  %v1316_v55 = vpop.permute.xlu1 %1315 }
 0x4d4   :  { %v1642_v45 = vmul.f32 %v2191_v61, %v1316_v55  ;;  %v1644_v53 = vmul.f32 %v2195_v36, %v1324_v50  ;;  %v2196_v36 = vunpack.c.h.bf16 %v3368_v29  ;;  %v2519_v29 = vld [vmem:[%s3679_s9 + $0x30] sm:$0xff]  }
 0x4d5   :  { %1564 = vbcast.lane.b32.xlu1 %v3329_v43, 352 }
 0x4d7   :  { %v3378_v57 = vpop.permute.xlu0 %1516  ;;  %v1320_v17 = vpop.permute.xlu1 %1319 }
 0x4d8   :  { %v1643_v11 = vmul.f32 %v2192_v58, %v1320_v17  ;;  %v1690_v25 = vmul.f32 %v2287_v33, %v3378_v57  ;;  %v2518_v17 = vld [vmem:[%s3679_s9 + $0x70] sm:$0xff]  }
 0x4d9   :  { %1371 = vbcast.lane.b32.xlu1 %v3325_v51, 368 }
 0x4da   :  { %v1706_v9 = vadd.f32 %v1643_v11, %v1642_v45 }
 0x4db   :  { %v1458_v19 = vpop.permute.xlu0 %1457  ;;  %v1383_v6 = vpop.permute.xlu1 %1382 }
 0x4dc   :  { %v3384_v62 = vadd.f32 %v1706_v9, %v1644_v53  ;;  %v1658_v32 = vmul.f32 %v2223_v18, %v1383_v6  ;;  %v1676_v39 = vmul.f32 %v2259_v30, %v1458_v19  ;;  %v2372_v9 = vld [vmem:[%s3674_s4 + $0xc8] sm:$0xff]  }
 0x4dd   :  { %1568 = vbcast.lane.b32.xlu1 %v3329_v43, 360 }
 0x4df   :  { %v1395_v20 = vpop.permute.xlu0 %1394  ;;  %v1387_v31 = vpop.permute.xlu1 %1386 }
 0x4e0   :  { %v1659_v3 = vmul.f32 %v2224_v26, %v1387_v31  ;;  %v1661_v46 = vmul.f32 %v2228_v15, %v1395_v20  ;;  %v2520_v26 = vld [vmem:[%s3679_s9 + $0x78] sm:$0xff]   ;;  %v2291_v31 = vunpack.c.l.bf16 %v2372_v9 }
 0x4e1   :  { %1375 = vbcast.lane.b32.xlu1 %v3325_v51, 376 }
 0x4e2   :  { %v1727_v5 = vadd.f32 %v1659_v3, %v1658_v32  ;;  %v2349_v32 = vld [vmem:[%s3674_s4 + $0x10] sm:$0xff]  }
 0x4e3   :  { %v1462_v27 = vpop.permute.xlu0 %1461  ;;  %v1450_v34 = vpop.permute.xlu1 %1449  ;;  %v2199_v24 = vunpack.c.l.bf16 %v2349_v32 }
 0x4e4   :  { %v1674_v7 = vmul.f32 %v2255_v1, %v1450_v34  ;;  %v1677_v23 = vmul.f32 %v2260_v37, %v1462_v27  ;;  %v2292_v1 = vunpack.c.h.bf16 %v2372_v9 }
 0x4e5   :  { %1572 = vbcast.lane.b32.xlu1 %v3329_v43, 368 }
 0x4e7   :  { %v1399_v12 = vpop.permute.xlu0 %1398  ;;  %v1454_v56 = vpop.permute.xlu1 %1453 }
 0x4e8   :  { %v1675_v35 = vmul.f32 %v2256_v38, %v1454_v56  ;;  %v1662_v45 = vmul.f32 %v2231_v13, %v1399_v12  ;;  %v2200_v12 = vunpack.c.h.bf16 %v2349_v32  ;;  %v3532_v32 = vld [vmem:[%s3674_s4 + $0xd0] sm:$0xff]  }
 0x4e9   :  { %1576 = vbcast.lane.b32.xlu1 %v3329_v43, 376  ;;  %v2516_v43 = vld [vmem:[%s3679_s9 + $0x68] sm:$0xff]  }
 0x4ea   :  { %v1748_v8 = vadd.f32 %v1675_v35, %v1674_v7  ;;  %2407 = vmatprep.subr.bf16.mxu1 %v2516_v43 }
 0x4eb   :  { %v1466_v59 = vpop.permute.xlu0 %1465  ;;  %v1391_v51 = vpop.permute.xlu1 %1390  ;;  %2408 = vmatpush3.bf16.msra.mxu1 %v2517_v2  ;;  %v2366_v2 = vld [vmem:[%s3674_s4 + $0x98] sm:$0xff]  }
 0x4ec   :  { %v1749_v63 = vadd.f32 %v1748_v8, %v1676_v39  ;;  %v1660_v44 = vmul.f32 %v2227_v16, %v1391_v51  ;;  %v1678_v10 = vmul.f32 %v2263_v22, %v1466_v59  ;;  %2409 = vmatprep.subr.bf16.mxu1 %v2518_v17  ;;  %v2232_v17 = vunpack.c.h.bf16 %v3421_v48 }
 0x4ee   :  { %v1750_v50 = vadd.f32 %v1749_v63, %v1677_v23  ;;  %v1728_v55 = vadd.f32 %v1727_v5, %v1660_v44 }
 0x4ef   :  { %v3442_v61 = vpop.permute.xlu0 %1402  ;;  %v1521_v58 = vpop.permute.xlu1 %1520  ;;  %2410 = vmatpush3.bf16.msra.mxu1 %v2519_v29 }
 0x4f0   :  { %v3448_v11 = vadd.f32 %v1750_v50, %v1678_v10  ;;  %v1729_v41 = vadd.f32 %v1728_v55, %v1661_v46  ;;  %v1691_v53 = vmul.f32 %v2288_v40, %v1521_v58  ;;  %2411 = vmatprep.subr.bf16.mxu1 %v2520_v26  ;;  %v2358_v55 = vld [vmem:[%s3674_s4 + $0x58] sm:$0xff]  }
 0x4f1   :  { %v2236_v9 = vunpack.c.h.bf16 %v2358_v55 }
 0x4f2   :  { %v3453_v57 = vadd.f32 %v1729_v41, %v1662_v45  ;;  %v1769_v19 = vadd.f32 %v1691_v53, %v1690_v25  ;;  %v2264_v25 = vunpack.c.h.bf16 %v3413_v47  ;;  %v2235_v45 = vunpack.c.l.bf16 %v2358_v55  ;;  %v2359_v53 = vld [vmem:[%s3674_s4 + $0x60] sm:$0xff]  }
 0x4f3   :  { %v1470_v6 = vpop.permute.xlu0 %1469  ;;  %v1328_v18 = vpop.permute.xlu1 %1327  ;;  %2412 = vmatpush3.bf16.msra.mxu1 %v2521_v49  ;;  %v2267_v41 = vunpack.c.l.bf16 %v2366_v2  ;;  %v3562_v55 = vld [vmem:[%s3674_s4 + $0x20] sm:$0xff]  }
 0x4f4   :  { %v1645_v20 = vmul.f32 %v2196_v36, %v1328_v18  ;;  %v1679_v29 = vmul.f32 %v2264_v25, %v1470_v6  ;;  %v2268_v18 = vunpack.c.h.bf16 %v2366_v2  ;;  %v3537_v6 = vld [vmem:[%s3674_s4 + $0x18] sm:$0xff]  }
 0x4f6   :  { %v1708_v3 = vadd.f32 %v3384_v62, %v1645_v20  ;;  %v1663_v20 = vmul.f32 %v2232_v17, %v3442_v61  ;;  %v2204_v17 = vunpack.c.h.bf16 %v3537_v6 }
 0x4f7   :  { %v1407_v4 = vpop.permute.xlu0 %1406  ;;  %v1525_v5 = vpop.permute.xlu1 %1524 }
 0x4f8   :  { %v1692_v21 = vmul.f32 %v2291_v31, %v1525_v5  ;;  %v1664_v48 = vmul.f32 %v2235_v45, %v1407_v4  ;;  %v2239_v31 = vunpack.c.l.bf16 %v2359_v53  ;;  %v2360_v5 = vld [vmem:[%s3674_s4 + $0x68] sm:$0xff]   ;;  %v1731_v61 = vadd.f32 %v3453_v57, %v1663_v20 }
 0x4f9   :  { %v2203_v57 = vunpack.c.l.bf16 %v3537_v6  ;;  %v2244_v45 = vunpack.c.h.bf16 %v2360_v5 }
 0x4fa   :  { %v1770_v54 = vadd.f32 %v1769_v19, %v1692_v21  ;;  %v2367_v19 = vld [vmem:[%s3674_s4 + $0xa0] sm:$0xff]   ;;  %v2240_v21 = vunpack.c.h.bf16 %v2359_v53 }
 0x4fb   :  { %v1474_v27 = vpop.permute.xlu0 %1473  ;;  %v1332_v34 = vpop.permute.xlu1 %1331  ;;  %v2271_v49 = vunpack.c.l.bf16 %v2367_v19 }
 0x4fc   :  { %v1646_v0 = vmul.f32 %v2199_v24, %v1332_v34  ;;  %v2368_v24 = vld [vmem:[%s3674_s4 + $0xa8] sm:$0xff]   ;;  %v2295_v34 = vunpack.c.l.bf16 %v3532_v32 }
 0x4fe   :  { %v1709_v38 = vadd.f32 %v1708_v3, %v1646_v0  ;;  %v1680_v3 = vmul.f32 %v2267_v41, %v1474_v27  ;;  %v2272_v0 = vunpack.c.h.bf16 %v2367_v19  ;;  %v2276_v19 = vunpack.c.h.bf16 %v2368_v24 }
 0x4ff   :  { %v1411_v30 = vpop.permute.xlu0 %1410  ;;  %v1529_v60 = vpop.permute.xlu1 %1528 }
 0x500   :  { %v1693_v62 = vmul.f32 %v2292_v1, %v1529_v60  ;;  %v1665_v4 = vmul.f32 %v2236_v9, %v1411_v30  ;;  %v1732_v60 = vadd.f32 %v1731_v61, %v1664_v48  ;;  %v2243_v30 = vunpack.c.l.bf16 %v2360_v5  ;;  %v2362_v5 = vld [vmem:[%s3674_s4 + $0x78] sm:$0xff]  }
 0x502   :  { %v3468_v56 = vadd.f32 %v1770_v54, %v1693_v62  ;;  %v1752_v54 = vadd.f32 %v3448_v11, %v1679_v29  ;;  %v1733_v2 = vadd.f32 %v1732_v60, %v1665_v4  ;;  %v2208_v4 = vunpack.c.h.bf16 %v3562_v55 }
 0x503   :  { %v1478_v14 = vpop.permute.xlu0 %1477  ;;  %v1336_v37 = vpop.permute.xlu1 %1335 }
 0x504   :  { %v1647_v7 = vmul.f32 %v2200_v12, %v1336_v37  ;;  %v1681_v27 = vmul.f32 %v2268_v18, %v1478_v14  ;;  %v3556_v12 = vld [vmem:[%s3674_s4 + $0xd8] sm:$0xff]   ;;  %v1753_v37 = vadd.f32 %v1752_v54, %v1680_v3  ;;  %v2296_v14 = vunpack.c.h.bf16 %v3532_v32  ;;  %v3580_v32 = vld [vmem:[%s3674_s4 + $0xe0] sm:$0xff]  }
 0x505   :  { %v2299_v9 = vunpack.c.l.bf16 %v3556_v12 }
 0x506   :  { %v3470_v35 = vadd.f32 %v1709_v38, %v1647_v7  ;;  %v2275_v7 = vunpack.c.l.bf16 %v2368_v24  ;;  %v1754_v41 = vadd.f32 %v1753_v37, %v1681_v27 }
 0x507   :  { %v1415_v16 = vpop.permute.xlu0 %1414  ;;  %v3472_v28 = vpop.permute.xlu1 %1532 }
 0x508   :  { %v1666_v62 = vmul.f32 %v2239_v31, %v1415_v16  ;;  %v2361_v16 = vld [vmem:[%s3674_s4 + $0x70] sm:$0xff]  }
 0x509   :  { %v2247_v31 = vunpack.c.l.bf16 %v2361_v16  ;;  %v2248_v24 = vunpack.c.h.bf16 %v2361_v16 }
 0x50a   :  { %v1734_v20 = vadd.f32 %v1733_v2, %v1666_v62 }
 0x50b   :  { %v1482_v39 = vpop.permute.xlu0 %1481  ;;  %v3474_v15 = vpop.permute.xlu1 %1339 }
 0x50c   :  { %v1682_v11 = vmul.f32 %v2271_v49, %v1482_v39  ;;  %v2369_v39 = vld [vmem:[%s3674_s4 + $0xb0] sm:$0xff]   ;;  %v2300_v49 = vunpack.c.h.bf16 %v3556_v12 }
 0x50d   :  { %v2279_v6 = vunpack.c.l.bf16 %v2369_v39  ;;  %v2280_v60 = vunpack.c.h.bf16 %v2369_v39  ;;  %v2252_v39 = vunpack.c.h.bf16 %v2362_v5 }
 0x50e   :  { %v1755_v3 = vadd.f32 %v1754_v41, %v1682_v11  ;;  %v2251_v11 = vunpack.c.l.bf16 %v2362_v5  ;;  %v1694_v41 = vmul.f32 %v2295_v34, %v3472_v28  ;;  %v2353_v28 = vld [vmem:[%s3674_s4 + $0x30] sm:$0xff]  }
 0x50f   :  { %v1419_v8 = vpop.permute.xlu0 %1418  ;;  %v3476_v22 = vpop.permute.xlu1 %1536 }
 0x510   :  { %v1667_v25 = vmul.f32 %v2240_v21, %v1419_v8  ;;  %v2207_v8 = vunpack.c.l.bf16 %v3562_v55  ;;  %v2352_v21 = vld [vmem:[%s3674_s4 + $0x28] sm:$0xff]  }
 0x511   :  { %v2211_v16 = vunpack.c.l.bf16 %v2352_v21 }
 0x512   :  { %v1735_v61 = vadd.f32 %v1734_v20, %v1667_v25 }
 0x513   :  { %v3478_v52 = vpop.permute.xlu0 %1485  ;;  %v3480_v42 = vpop.permute.xlu1 %1343 }
 0x514   :  { %v1683_v53 = vmul.f32 %v2272_v0, %v3478_v52  ;;  %v2303_v0 = vunpack.c.l.bf16 %v3580_v32  ;;  %v1649_v25 = vmul.f32 %v2204_v17, %v3480_v42  ;;  %v1695_v42 = vmul.f32 %v2296_v14, %v3476_v22 }
 0x516   :  { %v1756_v54 = vadd.f32 %v1755_v3, %v1683_v53 }
 0x517   :  { %v3482_v33 = vpop.permute.xlu0 %1422  ;;  %v3484_v13 = vpop.permute.xlu1 %1540 }
 0x518   :  { %v1668_v48 = vmul.f32 %v2243_v30, %v3482_v33 }
 0x51a   :  { %v1736_v12 = vadd.f32 %v1735_v61, %v1668_v48  ;;  %v2376_v61 = vld [vmem:[%s3674_s4 + $0xe8] sm:$0xff]  }
 0x51b   :  { %v3486_v59 = vpop.permute.xlu0 %1489  ;;  %v3488_v51 = vpop.permute.xlu1 %1347 }
 0x51c   :  { %v1684_v52 = vmul.f32 %v2275_v7, %v3486_v59  ;;  %v2370_v59 = vld [vmem:[%s3674_s4 + $0xb8] sm:$0xff]   ;;  %v1650_v20 = vmul.f32 %v2207_v8, %v3488_v51  ;;  %v1772_v51 = vadd.f32 %v3468_v56, %v1694_v41  ;;  %v1696_v8 = vmul.f32 %v2299_v9, %v3484_v13 }
 0x51d   :  { %v2283_v2 = vunpack.c.l.bf16 %v2370_v59  ;;  %v2354_v13 = vld [vmem:[%s3674_s4 + $0x38] sm:$0xff]  }
 0x51e   :  { %v1757_v7 = vadd.f32 %v1756_v54, %v1684_v52  ;;  %v2378_v41 = vld [vmem:[%s3674_s4 + $0xf8] sm:$0xff]  }
 0x51f   :  { %v3490_v43 = vpop.permute.xlu0 %1426  ;;  %v3492_v23 = vpop.permute.xlu1 %1544 }
 0x520   :  { %v1669_v33 = vmul.f32 %v2244_v45, %v3490_v43  ;;  %v1648_v43 = vmul.f32 %v2203_v57, %v3474_v15  ;;  %v2284_v57 = vunpack.c.h.bf16 %v2370_v59  ;;  %v2216_v59 = vunpack.c.h.bf16 %v2353_v28 }
 0x523   :  { %v3494_v63 = vpop.permute.xlu0 %1493  ;;  %v3496_v44 = vpop.permute.xlu1 %1351 }
 0x524   :  { %v1685_v27 = vmul.f32 %v2276_v19, %v3494_v63  ;;  %v1737_v63 = vadd.f32 %v1736_v12, %v1669_v33  ;;  %v1651_v34 = vmul.f32 %v2208_v4, %v3496_v44  ;;  %v2215_v33 = vunpack.c.l.bf16 %v2353_v28 }
 0x525   :  { %v1697_v44 = vmul.f32 %v2300_v49, %v3492_v23  ;;  %v2304_v4 = vunpack.c.h.bf16 %v3580_v32  ;;  %v2377_v32 = vld [vmem:[%s3674_s4 + $0xf0] sm:$0xff]   ;;  %v2219_v49 = vunpack.c.l.bf16 %v2354_v13  ;;  %s2592_s4 = smov [#allocation2]  }
 0x526   :  { %v1758_v53 = vadd.f32 %v1757_v7, %v1685_v27  ;;  %v2307_v27 = vunpack.c.l.bf16 %v2376_v61  ;;  %s1986_s17 = sshll.u32 %s2592_s4, 4  ;;  %s1987_s17 = int_to_ptr.vmem [resolvable:$true] %s1986_s17 }
 0x527   :  { %v3498_v40 = vpop.permute.xlu0 %1430  ;;  %v3500_v46 = vpop.permute.xlu1 %1548  ;;  %s2540_s7 = scalar_lea.vmem %s1987_s17, 64  ;;  %p2545_p1 = scmp.lt.s32.totalorder %s1987_s17, %s1987_s17 }
 0x528   :  { %v1670_v37 = vmul.f32 %v2247_v31, %v3498_v40  ;;  %v1711_v40 = vadd.f32 %v3470_v35, %v1648_v43  ;;  %v1698_v43 = vmul.f32 %v2303_v0, %v3500_v46  ;;  %p2541_p0 = scmp.ne.s32.totalorder %s1987_s17, %s2540_s7  ;;  %p2546_p2 = scmp.lt.s32.totalorder %s2540_s7, %s2540_s7 }
 0x52a   :  { %p2547_p3 = por %p2546_p2, %p2545_p1 }
 0x52b   :  { %v3502_v10 = vpop.permute.xlu0 %1497  ;;  %v3504_v50 = vpop.permute.xlu1 %1355 }
 0x52c   :  { %v1686_v55 = vmul.f32 %v2279_v6, %v3502_v10  ;;  %v1738_v10 = vadd.f32 %v1737_v63, %v1670_v37  ;;  %v1652_v14 = vmul.f32 %v2211_v16, %v3504_v50  ;;  %p2548_p4 = pnand %p2547_p3, %p2541_p0 }
 0x52e   :  { %v1759_v17 = vadd.f32 %v1758_v53, %v1686_v55  ;;  %v2312_v53 = vunpack.c.h.bf16 %v2377_v32 }
 0x52f   :  { %v3513_v58 = vpop.permute.xlu0 %1434  ;;  %v3515_v36 = vpop.permute.xlu1 %1552 }
 0x530   :  { %v1671_v45 = vmul.f32 %v2248_v24, %v3513_v58  ;;  %v2212_v58 = vunpack.c.h.bf16 %v2352_v21  ;;  %v1773_v21 = vadd.f32 %v1772_v51, %v1695_v42 }
 0x532   :  { %v1739_v52 = vadd.f32 %v1738_v10, %v1671_v45  ;;  %v1774_v54 = vadd.f32 %v1773_v21, %v1696_v8  ;;  %v2220_v45 = vunpack.c.h.bf16 %v2354_v13  ;;  %v2315_v10 = vunpack.c.l.bf16 %v2378_v41 }
 0x533   :  { %v3524_v47 = vpop.permute.xlu0 %1501  ;;  %v3526_v26 = vpop.permute.xlu1 %1359  ;;  %v2316_v8 = vunpack.c.h.bf16 %v2378_v41 }
 0x534   :  { %v1687_v15 = vmul.f32 %v2280_v60, %v3524_v47  ;;  %v1712_v47 = vadd.f32 %v1711_v40, %v1649_v25  ;;  %v1653_v24 = vmul.f32 %v2212_v58, %v3526_v26  ;;  %v1775_v37 = vadd.f32 %v1774_v54, %v1697_v44 }
 0x535   :  { %v1699_v26 = vmul.f32 %v2304_v4, %v3515_v36  ;;  %v2311_v25 = vunpack.c.l.bf16 %v2377_v32 }
 0x536   :  { %v1713_v22 = vadd.f32 %v1712_v47, %v1650_v20  ;;  %v1776_v46 = vadd.f32 %v1775_v37, %v1698_v43 }
 0x537   :  { %v3548_v1 = vpop.permute.xlu0 %1438  ;;  %v3550_v38 = vpop.permute.xlu1 %1556 }
 0x538   :  { %v1672_v48 = vmul.f32 %v2251_v11, %v3548_v1  ;;  %v1760_v1 = vadd.f32 %v1759_v17, %v1687_v15  ;;  %v1714_v9 = vadd.f32 %v1713_v22, %v1651_v34  ;;  %v2308_v11 = vunpack.c.h.bf16 %v2376_v61 }
 0x539   :  { %v1700_v0 = vmul.f32 %v2307_v27, %v3550_v38  ;;  %v1777_v15 = vadd.f32 %v1776_v46, %v1699_v26 }
 0x53a   :  { %v1715_v12 = vadd.f32 %v1714_v9, %v1652_v14 }
 0x53b   :  { %v1506_v29 = vpop.permute.xlu0 %1505  ;;  %v3573_v18 = vpop.permute.xlu1 %1363 }
 0x53c   :  { %v1688_v3 = vmul.f32 %v2283_v2, %v1506_v29  ;;  %v1740_v29 = vadd.f32 %v1739_v52, %v1672_v48  ;;  %v1654_v23 = vmul.f32 %v2215_v33, %v3573_v18  ;;  %v1716_v7 = vadd.f32 %v1715_v12, %v1653_v24 }
 0x53d   :  { %v1778_v48 = vadd.f32 %v1777_v15, %v1700_v0 }
 0x53e   :  { %v1761_v56 = vadd.f32 %v1760_v1, %v1688_v3  ;;  %v1717_v18 = vadd.f32 %v1716_v7, %v1654_v23 }
 0x53f   :  { %v1443_v62 = vpop.permute.xlu0 %1442  ;;  %v3597_v30 = vpop.permute.xlu1 %1560 }
 0x540   :  { %v1673_v35 = vmul.f32 %v2252_v39, %v1443_v62  ;;  %v1701_v36 = vmul.f32 %v2308_v11, %v3597_v30 }
 0x542   :  { %v1741_v50 = vadd.f32 %v1740_v29, %v1673_v35  ;;  %v1779_v58 = vadd.f32 %v1778_v48, %v1701_v36 }
 0x543   :  { %v1368_v19 = vpop.permute.xlu1 %1367  ;;  %v1510_v31 = vpop.permute.xlu0 %1509 }
 0x544   :  { %v1689_v6 = vmul.f32 %v2284_v57, %v1510_v31  ;;  %v1742_v55 = vrot.slane %v1741_v50, 4  ;;  %v1655_v16 = vmul.f32 %v2216_v59, %v1368_v19 }
 0x546   :  { %v1762_v60 = vadd.f32 %v1761_v56, %v1689_v6  ;;  %v1743_v57 = vadd.f32 %v1742_v55, %v1741_v50  ;;  %v1718_v40 = vadd.f32 %v1717_v18, %v1655_v16 }
 0x547   :  { %v1565_v5 = vpop.permute.xlu1 %1564 }
 0x548   :  { %v1763_v2 = vrot.slane %v1762_v60, 4  ;;  %v1702_v31 = vmul.f32 %v2311_v25, %v1565_v5  ;;  %v1744_v38 = vrot.slane %v1743_v57, 2 }
 0x54a   :  { %v1764_v19 = vadd.f32 %v1763_v2, %v1762_v60  ;;  %v1780_v52 = vadd.f32 %v1779_v58, %v1702_v31  ;;  %v1745_v1 = vadd.f32 %v1744_v38, %v1743_v57 }
 0x54b   :  { %v1372_v62 = vpop.permute.xlu1 %1371 }
 0x54c   :  { %v1656_v39 = vmul.f32 %v2219_v49, %v1372_v62  ;;  %v1765_v47 = vrot.slane %v1764_v19, 2  ;;  %v1746_v33 = vrot.slane %v1745_v1, 1 }
 0x54e   :  { %v1719_v42 = vadd.f32 %v1718_v40, %v1656_v39  ;;  %v1766_v22 = vadd.f32 %v1765_v47, %v1764_v19  ;;  %v1747_v9 = vadd.f32 %v1746_v33, %v1745_v1 }
 0x54f   :  { %v1569_v63 = vpop.permute.xlu1 %1568 }
 0x550   :  { %v1703_v3 = vmul.f32 %v2312_v53, %v1569_v63  ;;  %v1767_v4 = vrot.slane %v1766_v22, 1 }
 0x552   :  { %v1781_v30 = vadd.f32 %v1780_v52, %v1703_v3  ;;  %v1768_v59 = vadd.f32 %v1767_v4, %v1766_v22 }
 0x553   :  { %v1376_v20 = vpop.permute.xlu1 %1375 }
 0x554   :  { %v1657_v17 = vmul.f32 %v2220_v45, %v1376_v20 }
 0x556   :  { %v1720_v28 = vadd.f32 %v1719_v42, %v1657_v17 }
 0x557   :  { %v1573_v34 = vpop.permute.xlu1 %1572 }
 0x558   :  { %v1721_v35 = vrot.slane %v1720_v28, 4  ;;  %v1704_v51 = vmul.f32 %v2315_v10, %v1573_v34 }
 0x55a   :  { %v1722_v6 = vadd.f32 %v1721_v35, %v1720_v28  ;;  %v1782_v61 = vadd.f32 %v1781_v30, %v1704_v51 }
 0x55b   :  { %v1577_v14 = vpop.permute.xlu1 %1576 }
 0x55c   :  { %v1723_v29 = vrot.slane %v1722_v6, 2  ;;  %v1705_v5 = vmul.f32 %v2316_v8, %v1577_v14 }
 0x55e   :  { %v1724_v21 = vadd.f32 %v1723_v29, %v1722_v6  ;;  %v1783_v44 = vadd.f32 %v1782_v61, %v1705_v5 }
 0x560   :  { %v1725_v56 = vrot.slane %v1724_v21, 1  ;;  %v1784_v13 = vrot.slane %v1783_v44, 4 }
 0x562   :  { %v1726_v24 = vadd.f32 %v1725_v56, %v1724_v21  ;;  %v1785_v50 = vadd.f32 %v1784_v13, %v1783_v44 }
 0x564   :  { %v1786_v54 = vrot.slane %v1785_v50, 2  ;;  %v1794_v27 = vsel %vm1290_vm0, %v1747_v9, %v1726_v24 }
 0x565   :  { %v1795_v60 = vsel %vm1292_vm1, %v1768_v59, %v1794_v27 }
 0x566   :  { %v1787_v62 = vadd.f32 %v1786_v54, %v1785_v50 }
 0x568   :  { %v1788_v43 = vrot.slane %v1787_v62, 1 }
 0x56a   :  { %v1789_v12 = vadd.f32 %v1788_v43, %v1787_v62 }
 0x56c   :  { %v1796_v23 = vsel %vm1294_vm2, %v1789_v12, %v1795_v60 }
 0x56d   :  { %v1798_v32 = vpack.c.bf16 %v1796_v23, %v1796_v23 }
 0x56f   :  { %1967 = vmatmul.mubr.bf16.vlgmr.msra.gmra.mrb[4].mxu1 %v1798_v32 }
 0x570   :  { %2551 = shalt.err (!%p2548_p4)
}
 0x571   :  { %s2552_s5 = scalar_lea.hbm %s3682_s12, 64 }
 0x572   :  { %p2553_p5 = scmp.ne.s32.totalorder %s3682_s12, %s2552_s5  ;;  %p2556_p6 = scmp.lt.u32.totalorder %s2552_s5, %s3682_s12 }
 0x574   :  { %p2558_p7 = pnand %p2556_p6, %p2553_p5 }
 0x576   :  { %2561 = shalt.err (!%p2558_p7)
}
 0x577   :  { %1989 = dma.vmem_to_hbm [thread:$0]  %s1987_s17, 64, %s3682_s12, [#allocation3]  }
 0x578   :  { %s2562_s1 = scalar_lea.vmem %s1997_s19, 64  ;;  %p2567_p9 = scmp.lt.s32.totalorder %s1997_s19, %s1997_s19 }
 0x579   :  { %p2563_p8 = scmp.ne.s32.totalorder %s1997_s19, %s2562_s1  ;;  %p2568_p10 = scmp.lt.s32.totalorder %s2562_s1, %s2562_s1 }
 0x57b   :  { %p2569_p11 = por %p2568_p10, %p2567_p9 }
 0x57d   :  { %p2570_p12 = pnand %p2569_p11, %p2563_p8 }
 0x57f   :  { %2573 = shalt.err (!%p2570_p12)
}
 0x580   :  { %s2574_s25 = scalar_lea.hbm %s3683_s13, 64 }
 0x581   :  { %p2575_p13 = scmp.ne.s32.totalorder %s3683_s13, %s2574_s25  ;;  %p2578_p0 = scmp.lt.u32.totalorder %s2574_s25, %s3683_s13 }
 0x583   :  { %p2580_p1 = pnand %p2578_p0, %p2575_p13 }
 0x585   :  { %2583 = shalt.err (!%p2580_p1)
}
 0x586   :  { %1999 = dma.vmem_to_hbm [thread:$0]  %s1997_s19, 64, %s3683_s13, [#allocation5]   ;;  %v2044_v37 = vld [vmem:[%s3680_s10] ss:$0 sm:$0xff] }
 0x642   :  { %v2413_v49 = vpop.f32.mrb[4].mxu1 }
 0x643   :  { %v2414_v11 = vpop.f32.mrb[5].mxu1 }
 0x644   :  { %v2415_v26 = vadd.f32 %v2414_v11, %v2413_v49  ;;  %v2416_v7 = vpop.f32.mrb[6].mxu1 }
 0x645   :  { %v2417_v55 = vpop.f32.mrb[7].mxu1 }
 0x646   :  { %v1969_v16 = vadd.f32 %v2415_v26, %v2044_v37 }
 0x648   :  { %2538 = vtanh.f32 %v1969_v16 }
 0x652   :  { %v2539_v2 = vpop.eup %2538 }
 0x653   :  { %1975 = vst [vmem:[%s3681_s11] sm:$0xf] %v2539_v2 }
 0x654   :  { %2584 = dma.done.wait [#allocation3], 64  }
 0x655   :  { %2585 = vsyncadd [#allocation3], 4294967232 }
 0x656   :  { %2586 = dma.done.wait [#allocation5], 64  }
 0x657   :  { %2587 = vsyncadd [#allocation5], 4294967232 }
 0x658   :  { %2008 = vsyncpa [#allocation3], 1 }
 0x659   :  { %2009 = vsyncpa [#allocation5], 1 }

</bundles_post_ra>
